<compile_context>
chip_gen: v7x
topology: tpu7x:2x2x1
jax: 0.10.0
libtpu: 0.0.40
codegen_flags: <defaults>
</compile_context>

<pallas_src>
import jax
import jax.numpy as jnp
from jax.experimental import pallas as pl
from jax.experimental.pallas import tpu as pltpu


def _encoder_kernel(a_ref, x_ref, w1_ref, b1_ref, w2_ref, b2_ref,
                    wf_ref, bf_ref, o_ref):
    """One grid step = a tile of Bt graphs."""
    a = a_ref[...]                        # (Bt, N, N)
    x = x_ref[...]                        # (Bt, N, Din)
    bt, n = a.shape[0], a.shape[1]
    din = x.shape[2]
    hid = w1_ref.shape[1]

    def aggregate(feat):
        # VPU broadcast-MAC over the static node axis (N is small, e.g. 8):
        #   out[b, i, :] = sum_j a[b, i, j] * feat[b, j, :]
        # Keeps the per-graph aggregation off the MXU's serial push/drain path.
        acc = a[:, :, 0:1] * feat[:, 0:1, :]
        for j in range(1, n):
            acc = acc + a[:, :, j:j + 1] * feat[:, j:j + 1, :]
        return acc                                              # (Bt, N, F)

    # --- layer 1: relu((A @ x) @ W1 + b1) ---
    ax = aggregate(x)                                           # (Bt, N, Din)
    h = jnp.dot(ax.reshape(bt * n, din), w1_ref[...],
                preferred_element_type=jnp.float32)             # (Bt*N, H)
    h = jnp.maximum(h + b1_ref[...], 0.0)

    # --- layer 2: relu((A @ h) @ W2 + b2) ---
    ah = aggregate(h.reshape(bt, n, hid))                       # (Bt, N, H)
    h2 = jnp.dot(ah.reshape(bt * n, hid), w2_ref[...],
                 preferred_element_type=jnp.float32)            # (Bt*N, H)
    h2 = jnp.maximum(h2 + b2_ref[...], 0.0)

    # --- readout: fc(mean over nodes); 1/N folded into wf by the wrapper ---
    pooled = jnp.sum(h2.reshape(bt, n, hid), axis=1)            # (Bt, H)
    out = jnp.dot(pooled, wf_ref[...],
                  preferred_element_type=jnp.float32)           # (Bt, out_pad)
    o_ref[...] = out + bf_ref[...]


def _pick_tile(B, requested):
    """Pick graphs-per-step: big (overhead amortization) but keep >= 2 grid
    steps when the batch allows it, so both v7x TensorCores get work."""
    bt = max(1, min(requested, B))
    if bt >= B and B >= 16:
        bt = pl.cdiv(B, 2)      # 2 even-ish steps instead of a 1-step grid
    return bt


def molecular_graph_encoder_batched(x, adjacency, params, *, graphs_per_step=256):
    """x: (B, N, input_dim) f32; adjacency: (B, N, N) f32.
    params: w1 (in,hid), b1 (1,hid), w2 (hid,hid), b2 (1,hid),
            wf (hid,out), bf (1,out).  Returns (B, output_dim) f32."""
    B, N, Din = x.shape
    H = params["w1"].shape[1]
    out_dim = params["wf"].shape[1]

    # Fold the 1/N node-mean into the fc weights; lane-dense (128-multiple) pad.
    out_pad = 128 * pl.cdiv(out_dim, 128)
    wf = jnp.zeros((H, out_pad), jnp.float32).at[:, :out_dim].set(
        params["wf"] / float(N))
    bf = jnp.zeros((1, out_pad), jnp.float32).at[:, :out_dim].set(params["bf"])

    # Tile selection + batch padding so the grid tiles evenly.
    bt = _pick_tile(B, graphs_per_step)
    b_pad = bt * pl.cdiv(B, bt)
    if b_pad != B:
        x = jnp.pad(x, ((0, b_pad - B), (0, 0), (0, 0)))
        adjacency = jnp.pad(adjacency, ((0, b_pad - B), (0, 0), (0, 0)))

    def tiled(shape):
        nd = len(shape)
        return pl.BlockSpec((bt,) + tuple(shape[1:]),
                            lambda b, _nd=nd: (b,) + (0,) * (_nd - 1))

    def whole(arr):
        nd = arr.ndim
        return pl.BlockSpec(arr.shape, lambda b, _nd=nd: (0,) * _nd)

    flops = b_pad * (2 * N * N * Din + 2 * N * Din * H
                     + 2 * N * N * H + 2 * N * H * H + 2 * H * out_pad)
    bytes_accessed = 4 * (b_pad * (N * N + N * Din + out_pad)
                          + Din * H + H + H * H + H + H * out_pad + out_pad)

    out = pl.pallas_call(
        _encoder_kernel,
        out_shape=jax.ShapeDtypeStruct((b_pad, out_pad), jnp.float32),
        grid=(b_pad // bt,),
        in_specs=[tiled(adjacency.shape), tiled(x.shape),
                  whole(params["w1"]), whole(params["b1"]),
                  whole(params["w2"]), whole(params["b2"]),
                  whole(wf), whole(bf)],
        out_specs=pl.BlockSpec((bt, out_pad), lambda b: (b, 0)),
        compiler_params=pltpu.CompilerParams(
            dimension_semantics=("parallel",)),
        cost_estimate=pl.CostEstimate(flops=int(flops), transcendentals=0,
                                      bytes_accessed=int(bytes_accessed)),
    )(adjacency, x,
      params["w1"], params["b1"],
      params["w2"], params["b2"],
      wf, bf)
    return out[:B, :out_dim]


def molecular_graph_encoder(x, adjacency_matrix, params):
    """Single-graph API matching the PyTorch module: x (N, in), A (N, N).
    NOTE: a Bt=1 call is pure launch overhead — batch upstream for hot paths."""
    out = molecular_graph_encoder_batched(x[None], adjacency_matrix[None],
                                          params, graphs_per_step=1)
    return out[0]


def init_params(key, input_dim, hidden_dim, output_dim):
    """Deterministic synthetic parameters (PyTorch Linear shapes, pre-transposed)."""
    ks = jax.random.split(key, 6)
    def lin(kw, kb, fan_in, fan_out):
        bound = 1.0 / jnp.sqrt(fan_in)
        w = jax.random.uniform(kw, (fan_in, fan_out), jnp.float32, -bound, bound)
        b = jax.random.uniform(kb, (1, fan_out), jnp.float32, -bound, bound)
        return w, b
    w1, b1 = lin(ks[0], ks[1], input_dim, hidden_dim)
    w2, b2 = lin(ks[2], ks[3], hidden_dim, hidden_dim)
    wf, bf = lin(ks[4], ks[5], hidden_dim, output_dim)
    return {"w1": w1, "b1": b1, "w2": w2, "b2": b2, "wf": wf, "bf": bf}


if __name__ == "__main__":
    input_dim, hidden_dim, output_dim = 10, 32, 16
    num_nodes, batch = 8, 16

    key = jax.random.PRNGKey(0)
    k_x, k_a, k_p = jax.random.split(key, 3)

    x_b = jax.random.normal(k_x, (batch, num_nodes, input_dim), jnp.float32)
    # per-graph symmetric 0/1 adjacency with self-loops
    a_raw = (jax.random.uniform(k_a, (batch, num_nodes, num_nodes)) > 0.5
             ).astype(jnp.float32)
    eye = jnp.eye(num_nodes, dtype=jnp.float32)
    adj_b = jnp.clip(a_raw + jnp.swapaxes(a_raw, -1, -2) + eye, 0.0, 1.0)

    params = init_params(k_p, input_dim, hidden_dim, output_dim)

    # batched kernel: 16 graphs in one pallas_call (auto-split into 2 grid
    # steps of 8 graphs so a 2-TC chip keeps both cores busy)
    out_b = jax.block_until_ready(
        molecular_graph_encoder_batched(x_b, adj_b, params))

    # reference in plain JAX (same math as the PyTorch module), per graph
    def ref_one(x, a):
        h = jax.nn.relu(a @ x @ params["w1"] + params["b1"])
        h = jax.nn.relu(a @ h @ params["w2"] + params["b2"])
        return (h.mean(axis=0, keepdims=True) @ params["wf"] + params["bf"])[0]

    ref_b = jax.vmap(ref_one)(x_b, adj_b)
    assert out_b.shape == (batch, output_dim)
    assert jnp.allclose(out_b, ref_b, atol=1e-4, rtol=1e-4)

    # single-graph path (PyTorch module signature) still works
    out0 = jax.block_until_ready(
        molecular_graph_encoder(x_b[0], adj_b[0], params))
    assert out0.shape == (output_dim,)
    assert jnp.allclose(out0, ref_one(x_b[0], adj_b[0]), atol=1e-4, rtol=1e-4)

    print("KERNEL_OK")
</pallas_src>

<mosaic_0001>
module attributes {stable_mosaic.version = 11 : i64} {
  func.func @_encoder_kernel(%arg0: i32, %arg1: memref<8x8x8xf32, #tpu.memory_space<vmem>>, %arg2: memref<8x8x10xf32, #tpu.memory_space<vmem>>, %arg3: memref<10x32xf32, #tpu.memory_space<vmem>>, %arg4: memref<1x32xf32, #tpu.memory_space<vmem>>, %arg5: memref<32x32xf32, #tpu.memory_space<vmem>>, %arg6: memref<1x32xf32, #tpu.memory_space<vmem>>, %arg7: memref<32x128xf32, #tpu.memory_space<vmem>>, %arg8: memref<1x128xf32, #tpu.memory_space<vmem>>, %arg9: memref<8x128xf32, #tpu.memory_space<vmem>>) attributes {dimension_semantics = [#tpu.dimension_semantics<parallel>], iteration_bounds = array<i64: 2>, scalar_prefetch = 0 : i64, scratch_operands = 0 : i64, tpu.core_type = #tpu.core_type<tc>, window_params = [{transform_indices = @transform_0, window_bounds = array<i64: 8, 8, 8>}, {transform_indices = @transform_1, window_bounds = array<i64: 8, 8, 10>}, {pipeline_mode = #tpu.pipeline_mode<synchronous>, transform_indices = @transform_2, window_bounds = array<i64: 10, 32>}, {pipeline_mode = #tpu.pipeline_mode<synchronous>, transform_indices = @transform_3, window_bounds = array<i64: 1, 32>}, {pipeline_mode = #tpu.pipeline_mode<synchronous>, transform_indices = @transform_4, window_bounds = array<i64: 32, 32>}, {pipeline_mode = #tpu.pipeline_mode<synchronous>, transform_indices = @transform_5, window_bounds = array<i64: 1, 32>}, {pipeline_mode = #tpu.pipeline_mode<synchronous>, transform_indices = @transform_6, window_bounds = array<i64: 32, 128>}, {pipeline_mode = #tpu.pipeline_mode<synchronous>, transform_indices = @transform_7, window_bounds = array<i64: 1, 128>}, {transform_indices = @transform_8, window_bounds = array<i64: 8, 128>}]} {
    %c0 = arith.constant 0 : index
    %c0_0 = arith.constant 0 : index
    %c0_1 = arith.constant 0 : index
    %0 = vector.load %arg1[%c0, %c0_0, %c0_1] : memref<8x8x8xf32, #tpu.memory_space<vmem>>, vector<8x8x8xf32>
    %c0_2 = arith.constant 0 : index
    %c0_3 = arith.constant 0 : index
    %c0_4 = arith.constant 0 : index
    %1 = vector.load %arg2[%c0_2, %c0_3, %c0_4] : memref<8x8x10xf32, #tpu.memory_space<vmem>>, vector<8x8x10xf32>
    %2 = vector.extract_strided_slice %0 {offsets = [0, 0, 0], sizes = [8, 8, 1], strides = [1, 1, 1]} : vector<8x8x8xf32> to vector<8x8x1xf32>
    %3 = vector.extract_strided_slice %1 {offsets = [0, 0, 0], sizes = [8, 1, 10], strides = [1, 1, 1]} : vector<8x8x10xf32> to vector<8x1x10xf32>
    %4 = vector.broadcast %2 : vector<8x8x1xf32> to vector<8x8x10xf32>
    %5 = vector.broadcast %3 : vector<8x1x10xf32> to vector<8x8x10xf32>
    %6 = arith.mulf %4, %5 : vector<8x8x10xf32>
    %7 = vector.extract_strided_slice %0 {offsets = [0, 0, 1], sizes = [8, 8, 1], strides = [1, 1, 1]} : vector<8x8x8xf32> to vector<8x8x1xf32>
    %8 = vector.extract_strided_slice %1 {offsets = [0, 1, 0], sizes = [8, 1, 10], strides = [1, 1, 1]} : vector<8x8x10xf32> to vector<8x1x10xf32>
    %9 = vector.broadcast %7 : vector<8x8x1xf32> to vector<8x8x10xf32>
    %10 = vector.broadcast %8 : vector<8x1x10xf32> to vector<8x8x10xf32>
    %11 = arith.mulf %9, %10 : vector<8x8x10xf32>
    %12 = arith.addf %6, %11 : vector<8x8x10xf32>
    %13 = vector.extract_strided_slice %0 {offsets = [0, 0, 2], sizes = [8, 8, 1], strides = [1, 1, 1]} : vector<8x8x8xf32> to vector<8x8x1xf32>
    %14 = vector.extract_strided_slice %1 {offsets = [0, 2, 0], sizes = [8, 1, 10], strides = [1, 1, 1]} : vector<8x8x10xf32> to vector<8x1x10xf32>
    %15 = vector.broadcast %13 : vector<8x8x1xf32> to vector<8x8x10xf32>
    %16 = vector.broadcast %14 : vector<8x1x10xf32> to vector<8x8x10xf32>
    %17 = arith.mulf %15, %16 : vector<8x8x10xf32>
    %18 = arith.addf %12, %17 : vector<8x8x10xf32>
    %19 = vector.extract_strided_slice %0 {offsets = [0, 0, 3], sizes = [8, 8, 1], strides = [1, 1, 1]} : vector<8x8x8xf32> to vector<8x8x1xf32>
    %20 = vector.extract_strided_slice %1 {offsets = [0, 3, 0], sizes = [8, 1, 10], strides = [1, 1, 1]} : vector<8x8x10xf32> to vector<8x1x10xf32>
    %21 = vector.broadcast %19 : vector<8x8x1xf32> to vector<8x8x10xf32>
    %22 = vector.broadcast %20 : vector<8x1x10xf32> to vector<8x8x10xf32>
    %23 = arith.mulf %21, %22 : vector<8x8x10xf32>
    %24 = arith.addf %18, %23 : vector<8x8x10xf32>
    %25 = vector.extract_strided_slice %0 {offsets = [0, 0, 4], sizes = [8, 8, 1], strides = [1, 1, 1]} : vector<8x8x8xf32> to vector<8x8x1xf32>
    %26 = vector.extract_strided_slice %1 {offsets = [0, 4, 0], sizes = [8, 1, 10], strides = [1, 1, 1]} : vector<8x8x10xf32> to vector<8x1x10xf32>
    %27 = vector.broadcast %25 : vector<8x8x1xf32> to vector<8x8x10xf32>
    %28 = vector.broadcast %26 : vector<8x1x10xf32> to vector<8x8x10xf32>
    %29 = arith.mulf %27, %28 : vector<8x8x10xf32>
    %30 = arith.addf %24, %29 : vector<8x8x10xf32>
    %31 = vector.extract_strided_slice %0 {offsets = [0, 0, 5], sizes = [8, 8, 1], strides = [1, 1, 1]} : vector<8x8x8xf32> to vector<8x8x1xf32>
    %32 = vector.extract_strided_slice %1 {offsets = [0, 5, 0], sizes = [8, 1, 10], strides = [1, 1, 1]} : vector<8x8x10xf32> to vector<8x1x10xf32>
    %33 = vector.broadcast %31 : vector<8x8x1xf32> to vector<8x8x10xf32>
    %34 = vector.broadcast %32 : vector<8x1x10xf32> to vector<8x8x10xf32>
    %35 = arith.mulf %33, %34 : vector<8x8x10xf32>
    %36 = arith.addf %30, %35 : vector<8x8x10xf32>
    %37 = vector.extract_strided_slice %0 {offsets = [0, 0, 6], sizes = [8, 8, 1], strides = [1, 1, 1]} : vector<8x8x8xf32> to vector<8x8x1xf32>
    %38 = vector.extract_strided_slice %1 {offsets = [0, 6, 0], sizes = [8, 1, 10], strides = [1, 1, 1]} : vector<8x8x10xf32> to vector<8x1x10xf32>
    %39 = vector.broadcast %37 : vector<8x8x1xf32> to vector<8x8x10xf32>
    %40 = vector.broadcast %38 : vector<8x1x10xf32> to vector<8x8x10xf32>
    %41 = arith.mulf %39, %40 : vector<8x8x10xf32>
    %42 = arith.addf %36, %41 : vector<8x8x10xf32>
    %43 = vector.extract_strided_slice %0 {offsets = [0, 0, 7], sizes = [8, 8, 1], strides = [1, 1, 1]} : vector<8x8x8xf32> to vector<8x8x1xf32>
    %44 = vector.extract_strided_slice %1 {offsets = [0, 7, 0], sizes = [8, 1, 10], strides = [1, 1, 1]} : vector<8x8x10xf32> to vector<8x1x10xf32>
    %45 = vector.broadcast %43 : vector<8x8x1xf32> to vector<8x8x10xf32>
    %46 = vector.broadcast %44 : vector<8x1x10xf32> to vector<8x8x10xf32>
    %47 = arith.mulf %45, %46 : vector<8x8x10xf32>
    %48 = arith.addf %42, %47 : vector<8x8x10xf32>
    %49 = vector.shape_cast %48 : vector<8x8x10xf32> to vector<64x10xf32>
    %c0_5 = arith.constant 0 : index
    %c0_6 = arith.constant 0 : index
    %50 = vector.load %arg3[%c0_5, %c0_6] : memref<10x32xf32, #tpu.memory_space<vmem>>, vector<10x32xf32>
    %cst = arith.constant dense<0.000000e+00> : vector<64x32xf32>
    %51 = tpu.matmul %49, %50, %cst {dimension_numbers = #tpu.dot_dimension_numbers<[1], [0], [0], [1], [0, 0, 1, 1], [], []>} : vector<64x10xf32>, vector<10x32xf32>, vector<64x32xf32> -> vector<64x32xf32>
    %c0_7 = arith.constant 0 : index
    %c0_8 = arith.constant 0 : index
    %52 = vector.load %arg4[%c0_7, %c0_8] : memref<1x32xf32, #tpu.memory_space<vmem>>, vector<1x32xf32>
    %53 = vector.broadcast %52 : vector<1x32xf32> to vector<64x32xf32>
    %54 = arith.addf %51, %53 : vector<64x32xf32>
    %cst_9 = arith.constant 0.000000e+00 : f32
    %55 = vector.broadcast %cst_9 : f32 to vector<64x32xf32>
    %56 = arith.maximumf %54, %55 : vector<64x32xf32>
    %57 = vector.shape_cast %56 : vector<64x32xf32> to vector<8x8x32xf32>
    %58 = vector.extract_strided_slice %0 {offsets = [0, 0, 0], sizes = [8, 8, 1], strides = [1, 1, 1]} : vector<8x8x8xf32> to vector<8x8x1xf32>
    %59 = vector.extract_strided_slice %57 {offsets = [0, 0, 0], sizes = [8, 1, 32], strides = [1, 1, 1]} : vector<8x8x32xf32> to vector<8x1x32xf32>
    %60 = vector.broadcast %58 : vector<8x8x1xf32> to vector<8x8x32xf32>
    %61 = vector.broadcast %59 : vector<8x1x32xf32> to vector<8x8x32xf32>
    %62 = arith.mulf %60, %61 : vector<8x8x32xf32>
    %63 = vector.extract_strided_slice %0 {offsets = [0, 0, 1], sizes = [8, 8, 1], strides = [1, 1, 1]} : vector<8x8x8xf32> to vector<8x8x1xf32>
    %64 = vector.extract_strided_slice %57 {offsets = [0, 1, 0], sizes = [8, 1, 32], strides = [1, 1, 1]} : vector<8x8x32xf32> to vector<8x1x32xf32>
    %65 = vector.broadcast %63 : vector<8x8x1xf32> to vector<8x8x32xf32>
    %66 = vector.broadcast %64 : vector<8x1x32xf32> to vector<8x8x32xf32>
    %67 = arith.mulf %65, %66 : vector<8x8x32xf32>
    %68 = arith.addf %62, %67 : vector<8x8x32xf32>
    %69 = vector.extract_strided_slice %0 {offsets = [0, 0, 2], sizes = [8, 8, 1], strides = [1, 1, 1]} : vector<8x8x8xf32> to vector<8x8x1xf32>
    %70 = vector.extract_strided_slice %57 {offsets = [0, 2, 0], sizes = [8, 1, 32], strides = [1, 1, 1]} : vector<8x8x32xf32> to vector<8x1x32xf32>
    %71 = vector.broadcast %69 : vector<8x8x1xf32> to vector<8x8x32xf32>
    %72 = vector.broadcast %70 : vector<8x1x32xf32> to vector<8x8x32xf32>
    %73 = arith.mulf %71, %72 : vector<8x8x32xf32>
    %74 = arith.addf %68, %73 : vector<8x8x32xf32>
    %75 = vector.extract_strided_slice %0 {offsets = [0, 0, 3], sizes = [8, 8, 1], strides = [1, 1, 1]} : vector<8x8x8xf32> to vector<8x8x1xf32>
    %76 = vector.extract_strided_slice %57 {offsets = [0, 3, 0], sizes = [8, 1, 32], strides = [1, 1, 1]} : vector<8x8x32xf32> to vector<8x1x32xf32>
    %77 = vector.broadcast %75 : vector<8x8x1xf32> to vector<8x8x32xf32>
    %78 = vector.broadcast %76 : vector<8x1x32xf32> to vector<8x8x32xf32>
    %79 = arith.mulf %77, %78 : vector<8x8x32xf32>
    %80 = arith.addf %74, %79 : vector<8x8x32xf32>
    %81 = vector.extract_strided_slice %0 {offsets = [0, 0, 4], sizes = [8, 8, 1], strides = [1, 1, 1]} : vector<8x8x8xf32> to vector<8x8x1xf32>
    %82 = vector.extract_strided_slice %57 {offsets = [0, 4, 0], sizes = [8, 1, 32], strides = [1, 1, 1]} : vector<8x8x32xf32> to vector<8x1x32xf32>
    %83 = vector.broadcast %81 : vector<8x8x1xf32> to vector<8x8x32xf32>
    %84 = vector.broadcast %82 : vector<8x1x32xf32> to vector<8x8x32xf32>
    %85 = arith.mulf %83, %84 : vector<8x8x32xf32>
    %86 = arith.addf %80, %85 : vector<8x8x32xf32>
    %87 = vector.extract_strided_slice %0 {offsets = [0, 0, 5], sizes = [8, 8, 1], strides = [1, 1, 1]} : vector<8x8x8xf32> to vector<8x8x1xf32>
    %88 = vector.extract_strided_slice %57 {offsets = [0, 5, 0], sizes = [8, 1, 32], strides = [1, 1, 1]} : vector<8x8x32xf32> to vector<8x1x32xf32>
    %89 = vector.broadcast %87 : vector<8x8x1xf32> to vector<8x8x32xf32>
    %90 = vector.broadcast %88 : vector<8x1x32xf32> to vector<8x8x32xf32>
    %91 = arith.mulf %89, %90 : vector<8x8x32xf32>
    %92 = arith.addf %86, %91 : vector<8x8x32xf32>
    %93 = vector.extract_strided_slice %0 {offsets = [0, 0, 6], sizes = [8, 8, 1], strides = [1, 1, 1]} : vector<8x8x8xf32> to vector<8x8x1xf32>
    %94 = vector.extract_strided_slice %57 {offsets = [0, 6, 0], sizes = [8, 1, 32], strides = [1, 1, 1]} : vector<8x8x32xf32> to vector<8x1x32xf32>
    %95 = vector.broadcast %93 : vector<8x8x1xf32> to vector<8x8x32xf32>
    %96 = vector.broadcast %94 : vector<8x1x32xf32> to vector<8x8x32xf32>
    %97 = arith.mulf %95, %96 : vector<8x8x32xf32>
    %98 = arith.addf %92, %97 : vector<8x8x32xf32>
    %99 = vector.extract_strided_slice %0 {offsets = [0, 0, 7], sizes = [8, 8, 1], strides = [1, 1, 1]} : vector<8x8x8xf32> to vector<8x8x1xf32>
    %100 = vector.extract_strided_slice %57 {offsets = [0, 7, 0], sizes = [8, 1, 32], strides = [1, 1, 1]} : vector<8x8x32xf32> to vector<8x1x32xf32>
    %101 = vector.broadcast %99 : vector<8x8x1xf32> to vector<8x8x32xf32>
    %102 = vector.broadcast %100 : vector<8x1x32xf32> to vector<8x8x32xf32>
    %103 = arith.mulf %101, %102 : vector<8x8x32xf32>
    %104 = arith.addf %98, %103 : vector<8x8x32xf32>
    %105 = vector.shape_cast %104 : vector<8x8x32xf32> to vector<64x32xf32>
    %c0_10 = arith.constant 0 : index
    %c0_11 = arith.constant 0 : index
    %106 = vector.load %arg5[%c0_10, %c0_11] : memref<32x32xf32, #tpu.memory_space<vmem>>, vector<32x32xf32>
    %cst_12 = arith.constant dense<0.000000e+00> : vector<64x32xf32>
    %107 = tpu.matmul %105, %106, %cst_12 {dimension_numbers = #tpu.dot_dimension_numbers<[1], [0], [0], [1], [0, 0, 1, 1], [], []>} : vector<64x32xf32>, vector<32x32xf32>, vector<64x32xf32> -> vector<64x32xf32>
    %c0_13 = arith.constant 0 : index
    %c0_14 = arith.constant 0 : index
    %108 = vector.load %arg6[%c0_13, %c0_14] : memref<1x32xf32, #tpu.memory_space<vmem>>, vector<1x32xf32>
    %109 = vector.broadcast %108 : vector<1x32xf32> to vector<64x32xf32>
    %110 = arith.addf %107, %109 : vector<64x32xf32>
    %cst_15 = arith.constant 0.000000e+00 : f32
    %111 = vector.broadcast %cst_15 : f32 to vector<64x32xf32>
    %112 = arith.maximumf %110, %111 : vector<64x32xf32>
    %113 = vector.shape_cast %112 : vector<64x32xf32> to vector<8x8x32xf32>
    %cst_16 = arith.constant dense<0.000000e+00> : vector<8x32xf32>
    %114 = vector.multi_reduction <add>, %113, %cst_16 [1] : vector<8x8x32xf32> to vector<8x32xf32>
    %c0_17 = arith.constant 0 : index
    %c0_18 = arith.constant 0 : index
    %115 = vector.load %arg7[%c0_17, %c0_18] : memref<32x128xf32, #tpu.memory_space<vmem>>, vector<32x128xf32>
    %cst_19 = arith.constant dense<0.000000e+00> : vector<8x128xf32>
    %116 = tpu.matmul %114, %115, %cst_19 {dimension_numbers = #tpu.dot_dimension_numbers<[1], [0], [0], [1], [0, 0, 1, 1], [], []>} : vector<8x32xf32>, vector<32x128xf32>, vector<8x128xf32> -> vector<8x128xf32>
    %c0_20 = arith.constant 0 : index
    %c0_21 = arith.constant 0 : index
    %117 = vector.load %arg8[%c0_20, %c0_21] : memref<1x128xf32, #tpu.memory_space<vmem>>, vector<1x128xf32>
    %118 = vector.broadcast %117 : vector<1x128xf32> to vector<8x128xf32>
    %119 = arith.addf %116, %118 : vector<8x128xf32>
    %c0_22 = arith.constant 0 : index
    %c0_23 = arith.constant 0 : index
    %120 = vector.load %arg9[%c0_22, %c0_23] : memref<8x128xf32, #tpu.memory_space<vmem>>, vector<8x128xf32>
    tpu.vector_store %arg9[%c0_22, %c0_23], %119 {strides = array<i32>} : memref<8x128xf32, #tpu.memory_space<vmem>>, vector<8x128xf32>,
    return
  }
  func.func @transform_0(%arg0: i32) -> (i32, i32, i32) {
    %c0_i32 = arith.constant 0 : i32
    %c0_i32_0 = arith.constant 0 : i32
    %c0_i32_1 = arith.constant 0 : i32
    return %arg0, %c0_i32, %c0_i32_0 : i32, i32, i32
  }
  func.func @transform_1(%arg0: i32) -> (i32, i32, i32) {
    %c0_i32 = arith.constant 0 : i32
    %c0_i32_0 = arith.constant 0 : i32
    %c0_i32_1 = arith.constant 0 : i32
    return %arg0, %c0_i32, %c0_i32_0 : i32, i32, i32
  }
  func.func @transform_2(%arg0: i32) -> (i32, i32) {
    %c0_i32 = arith.constant 0 : i32
    %c0_i32_0 = arith.constant 0 : i32
    %c0_i32_1 = arith.constant 0 : i32
    return %c0_i32, %c0_i32_0 : i32, i32
  }
  func.func @transform_3(%arg0: i32) -> (i32, i32) {
    %c0_i32 = arith.constant 0 : i32
    %c0_i32_0 = arith.constant 0 : i32
    %c0_i32_1 = arith.constant 0 : i32
    return %c0_i32, %c0_i32_0 : i32, i32
  }
  func.func @transform_4(%arg0: i32) -> (i32, i32) {
    %c0_i32 = arith.constant 0 : i32
    %c0_i32_0 = arith.constant 0 : i32
    %c0_i32_1 = arith.constant 0 : i32
    return %c0_i32, %c0_i32_0 : i32, i32
  }
  func.func @transform_5(%arg0: i32) -> (i32, i32) {
    %c0_i32 = arith.constant 0 : i32
    %c0_i32_0 = arith.constant 0 : i32
    %c0_i32_1 = arith.constant 0 : i32
    return %c0_i32, %c0_i32_0 : i32, i32
  }
  func.func @transform_6(%arg0: i32) -> (i32, i32) {
    %c0_i32 = arith.constant 0 : i32
    %c0_i32_0 = arith.constant 0 : i32
    %c0_i32_1 = arith.constant 0 : i32
    return %c0_i32, %c0_i32_0 : i32, i32
  }
  func.func @transform_7(%arg0: i32) -> (i32, i32) {
    %c0_i32 = arith.constant 0 : i32
    %c0_i32_0 = arith.constant 0 : i32
    %c0_i32_1 = arith.constant 0 : i32
    return %c0_i32, %c0_i32_0 : i32, i32
  }
  func.func @transform_8(%arg0: i32) -> (i32, i32) {
    %c0_i32 = arith.constant 0 : i32
    %c0_i32_0 = arith.constant 0 : i32
    return %arg0, %c0_i32 : i32, i32
  }
}

</mosaic_0001>

<bundles_post_ra>
// kernel: tpu_custom_call.1
= control target key start
LH: loop header
LB: loop body
LE: loop exit
PB: predicated region body
PF: predicated region fallthrough
CT: control target
= control target key end

     0   :  { %13 = vsyncpa [#allocation3], 0  ;;  %s3035_s0 = inlined_call_operand.vmem [shape: f32[16,8,8], index: 0, kind: input, shape index: {}]   ;;  %s3036_s1 = inlined_call_operand.vmem [shape: f32[16,8,10], index: 1, kind: input, shape index: {}]   ;;  %s3037_s2 = inlined_call_operand.vmem [shape: f32[10,32], index: 2, kind: input, shape index: {}]   ;;  %s3038_s3 = inlined_call_operand.vmem [shape: f32[1,32], index: 3, kind: input, shape index: {}]   ;;  %s3039_s4 = inlined_call_operand.vmem [shape: f32[32,32], index: 4, kind: input, shape index: {}]   ;;  %s3040_s5 = inlined_call_operand.vmem [shape: f32[1,32], index: 5, kind: input, shape index: {}]   ;;  %s3041_s6 = inlined_call_operand.vmem [shape: f32[32,128], index: 6, kind: input, shape index: {}]   ;;  %s3042_s7 = inlined_call_operand.vmem [shape: f32[1,128], index: 7, kind: input, shape index: {}]   ;;  %s3043_s8 = inlined_call_operand.hbm [shape: f32[16,128], index: 8, kind: output, shape index: {}]  }
   0x1   :  { %15 = vsyncpa [#allocation3 + $0x1], 0  ;;  %s2255_s27 = smov 0   ;;  %s2257_s28 = smov 0  }
   0x2   :  { %s2259_s29 = smov 0   ;;  %s2261_s30 = smov 0  }
   0x3 LB: > { %s2276_s9 = sadd.s32 4294967295, %s2195_s30   ;;  %s1907_s10 = sadd.s32 4294967294, %s2195_s30   ;;  %s2195_s30 = sphi %s2261_s30, %s3145_s30   ;;  %s2191_s29 = sphi %s2259_s29, %s3144_s29   ;;  %s2187_s28 = sphi %s2257_s28, %s3143_s28   ;;  %s2183_s27 = sphi %s2255_s27, %s3142_s27  }
   0x4   : > { %s2280_s11 = sadd.s32 1, %s2195_s30   ;;  %s206_s12 = sadd.s32 1, %s2191_s29 }
   0x5   : > { %s203_s13 = ssub.s32 %s2195_s30, %s2280_s11  ;;  %p216_p0 = scmp.ne.s32.totalorder %s2191_s29, %s2187_s28 }
   0x6   : > { %p204_p1 = scmp.eq.s32.totalorder %s203_s13, 0  ;;  %p217_p2 = scmp.eq.s32.totalorder %s2276_s9, 1 }
   0x7   : > { %p222_p3 = scmp.ne.s32.totalorder %s2187_s28, %s2183_s27  ;;  %p223_p4 = scmp.eq.s32.totalorder %s1907_s10, 1 }
   0x8   : > { %s2291_s14 = scalar_select %p204_p1, %s2191_s29, %s206_s12  }
   0x9   : > { %p2293_p5 = por %p217_p2, %p216_p0  ;;  %p2297_p6 = por %p223_p4, %p222_p3 }
   0xa   : > { %p1910_p7 = scmp.ge.s32.totalorder %s2195_s30, 1  ;;  %p277_p8 = scmp.lt.s32.totalorder %s2195_s30, 3 }
   0xc   : > { %p278_p9 = pnand %p1910_p7, %p277_p8 }
   0xe   : > { %281 = sbr.rel (%p278_p9) target bundleno = 1053 (0x41d), region = 52 }
  0x15   : > { %s1912_s17 = sshll.u32 %s2276_s9, 3  ;;  %v2197_v0 = vmov 2   ;;  %v2198_v1 = vmov 0   ;;  %v2199_v4 = vmov 3   ;;  %v2200_v5 = vmov 1   ;;  %v984_v16 = vld [vmem:[%s3037_s2] sm:$0xff] }
  0x16   : > { %2089 = vset.pattern.permute.xlu0 %v2197_v0  ;;  %2086 = vset.pattern.permute.xlu1 %v2198_v1  ;;  %p317_p10 = scmp.lt.s32.totalorder %s1912_s17, 15  ;;  %v2201_v11 = vmov 7   ;;  %v2202_v12 = vmov 4   ;;  %v2203_v14 = vmov 5   ;;  %v2204_v15 = vmov 6   ;;  %s313_s23 = sand.u32 1, %s2187_s28  }
  0x17   : > { %v985_v17 = vld [vmem:[%s3037_s2 + $0x8] sm:$0x3]  ;;  %vm1018_vm0 = vcmask 1041408   ;;  %vm2205_vm1 = vmmov 1   ;;  %v384_v44 = vlaneseq  ;;  %vm993_vm3 = vcmask 80896   ;;  %s1911_s24 = sshll.u32 %s313_s23, 3 }
  0x18   : > { %s3147_s17 = smov (!%p317_p10, %s1912_s17), 15  ;;  %v2015_v18 = vpack.c.bf16 %v985_v17, %v984_v16  ;;  %vm2016_vm2 = vmpackc.low %vm1018_vm0, %vm2205_vm1  ;;  %vm1522_vm4 = vcmask 261120   ;;  %vm2207_vm5 = vmmov 0   ;;  %vm1735_vm6 = vcmask 1041409   ;;  %s1938_s10 = sshll.u32 %s2276_s9, 7 }
  0x19   : > { %s1913_s18 = sshll.u32 %s3147_s17, 3  ;;  %v385_v47 = vshrl.u32 %v384_v44, 7  ;;  %vm1737_vm7 = vcmask 1042434   ;;  %vm1739_vm8 = vcmask 1043459   ;;  %vm1741_vm9 = vcmask 1044484   ;;  %s2993_s19 = scalar_lea.hbm %s3043_s8, %s1938_s10 }
  0x1a   : > { %s2314_s21 = scalar_lea.vmem %s3035_s0, %s1913_s18  ;;  %2017 = vmatprep.subr.msk.bf16.mxu0 %vm2016_vm2, %v2015_v18  ;;  %s2514_s12 = scalar_lea.vmem %s3036_s1, %s1913_s18  ;;  %vm1743_vm10 = vcmask 1045509   ;;  %vm1745_vm11 = vcmask 1046534   ;;  %vm1747_vm12 = vcmask 1047559  }
  0x1b   : > { %v2317_v2 = vld [vmem:[%s2314_s21 + $0x8] sm:$0xff]  ;;  %v2322_v3 = vld [vmem:[%s2314_s21] sm:$0xff]  ;;  %v2332_v6 = vld [vmem:[%s2314_s21 + $0x18] sm:$0xff]  ;;  %2020 = vmatpush3.bf16.msk.msra.mxu0 %vm2016_vm2, %v2015_v18  ;;  %v2516_v48 = vsub.s32 1, %v385_v47  ;;  %v2522_v51 = vsub.s32 0, %v385_v47  ;;  %v2525_v53 = vsub.s32 2, %v385_v47 }
  0x1c   : > { %509 = vperm.xlu0 %2089, %v2317_v2   ;;  %351 = vperm.xlu1 %2086, %v2317_v2   ;;  %v2335_v7 = vld [vmem:[%s2314_s21 + $0x10] sm:$0xff]  ;;  %v2344_v8 = vld [vmem:[%s2314_s21 + $0x20] sm:$0xff]  ;;  %v2359_v10 = vld [vmem:[%s2314_s21 + $0x38] sm:$0xff]  ;;  %v2538_v63 = vsub.s32 3, %v385_v47  ;;  %v2558_v16 = vsub.s32 6, %v385_v47  ;;  %s1823_s20 = scalar_lea.sflag [#allocation3], %s313_s23 }
  0x1d   : > { %v2349_v9 = vld [vmem:[%s2314_s21 + $0x30] sm:$0xff]  ;;  %v2378_v13 = vld [vmem:[%s2314_s21 + $0x28] sm:$0xff]  ;;  %v336_v55 = vld [vmem:[%s2514_s12] sm:$0xff]  ;;  %s2209_s9 = smov [#allocation2]  }
  0x1e   : > { %v337_v52 = vld [vmem:[%s2514_s12 + $0x8] sm:$0xff]  ;;  %v387_v56 = vrot.slane %v336_v55, %v2522_v51  ;;  %v459_v57 = vrot.slane %v336_v55, %v2516_v48  ;;  %s2137_s22 = sshll.u32 %s2209_s9, 4  ;;  %s2138_s22 = int_to_ptr.vmem [resolvable:$false] %s2137_s22 }
  0x1f   : > { %v463_v54 = vrot.slane %v337_v52, %v2516_v48  ;;  %v391_v58 = vrot.slane %v337_v52, %v2522_v51  ;;  %v543_v61 = vrot.slane %v337_v52, %v2525_v53 }
  0x20   : > { %2092 = vset.pattern.permute.xlu0 %v2199_v4  ;;  %2087 = vset.pattern.permute.xlu1 %v2200_v5 }
  0x21   : > { %429 = vperm.xlu1 %2087, %v2317_v2   ;;  %585 = vperm.xlu0 %2092, %v2322_v3  }
  0x25   : > { %2088 = vset.pattern.permute.xlu1 %v2197_v0  ;;  %589 = vperm.xlu0 %2092, %v2317_v2  }
  0x26   : > { %505 = vperm.xlu1 %2088, %v2322_v3  }
  0x29   : > { %597 = vperm.xlu0 %2092, %v2332_v6  }
  0x2a   : > { %2090 = vset.pattern.permute.xlu1 %v2198_v1 }
  0x2b   : > { %356 = vperm.xlu1 %2090, %v2335_v7  }
  0x2d   : > { %2101 = vset.pattern.permute.xlu0 %v2198_v1 }
  0x2e   : > { %346 = vperm.xlu0 %2101, %v2322_v3  }
  0x2f   : > { %2091 = vset.pattern.permute.xlu1 %v2200_v5 }
  0x30   : > { %433 = vperm.xlu1 %2091, %v2335_v7  }
  0x32   : > { %366 = vperm.xlu0 %2101, %v2344_v8  }
  0x34   : > { %2093 = vset.pattern.permute.xlu1 %v2198_v1 }
  0x35   : > { %361 = vperm.xlu1 %2093, %v2332_v6  }
  0x36   : > { %376 = vperm.xlu0 %2101, %v2349_v9  }
  0x39   : > { %2094 = vset.pattern.permute.xlu1 %v2200_v5 }
  0x3a   : > { %2107 = vset.pattern.permute.xlu0 %v2200_v5  ;;  %437 = vperm.xlu1 %2094, %v2332_v6  }
  0x3b   : > { %425 = vperm.xlu0 %2107, %v2322_v3  }
  0x3e   : > { %2095 = vset.pattern.permute.xlu1 %v2197_v0 }
  0x3f   : > { %453 = vperm.xlu0 %2107, %v2359_v10   ;;  %513 = vperm.xlu1 %2095, %v2335_v7  }
  0x43   : > { %2114 = vset.pattern.permute.xlu0 %v2201_v11  ;;  %517 = vperm.xlu1 %2095, %v2332_v6  }
  0x44   : > { %909 = vperm.xlu0 %2114, %v2317_v2  }
  0x47   : > { %2096 = vset.pattern.permute.xlu1 %v2202_v12 }
  0x48   : > { %2115 = vset.pattern.permute.xlu0 %v2202_v12  ;;  %669 = vperm.xlu1 %2096, %v2317_v2  }
  0x49   : > { %665 = vperm.xlu0 %2115, %v2322_v3  }
  0x4c   : > { %2097 = vset.pattern.permute.xlu1 %v2200_v5 }
  0x4d   : > { %673 = vperm.xlu0 %2115, %v2335_v7   ;;  %441 = vperm.xlu1 %2097, %v2344_v8  }
  0x51   : > { %677 = vperm.xlu0 %2115, %v2332_v6   ;;  %2098 = vset.pattern.permute.xlu1 %v2199_v4 }
  0x52   : > { %593 = vperm.xlu1 %2098, %v2335_v7  }
  0x55   : > { %689 = vperm.xlu0 %2115, %v2349_v9  }
  0x56   : > { %2099 = vset.pattern.permute.xlu1 %v2198_v1 }
  0x57   : > { %371 = vperm.xlu1 %2099, %v2378_v13  }
  0x59   : > { %2124 = vset.pattern.permute.xlu0 %v2203_v14 }
  0x5a   : > { %745 = vperm.xlu0 %2124, %v2322_v3  }
  0x5b   : > { %2100 = vset.pattern.permute.xlu1 %v2200_v5 }
  0x5c   : > { %445 = vperm.xlu1 %2100, %v2378_v13  }
  0x5e   : > { %753 = vperm.xlu0 %2124, %v2335_v7  }
  0x60   : > { %2102 = vset.pattern.permute.xlu1 %v2203_v14 }
  0x61   : > { %749 = vperm.xlu1 %2102, %v2317_v2  }
  0x62   : > { %761 = vperm.xlu0 %2124, %v2344_v8  }
  0x65   : > { %2103 = vset.pattern.permute.xlu1 %v2197_v0 }
  0x66   : > { %765 = vperm.xlu0 %2124, %v2378_v13   ;;  %521 = vperm.xlu1 %2103, %v2344_v8  }
  0x6a   : > { %773 = vperm.xlu0 %2124, %v2359_v10   ;;  %2104 = vset.pattern.permute.xlu1 %v2204_v15 }
  0x6b   : > { %825 = vperm.xlu1 %2104, %v2322_v3  }
  0x6e   : > { %2129 = vset.pattern.permute.xlu0 %v2204_v15 }
  0x6f   : > { %833 = vperm.xlu0 %2129, %v2335_v7   ;;  %2105 = vset.pattern.permute.xlu1 %v2197_v0 }
  0x70   : > { %525 = vperm.xlu1 %2105, %v2378_v13  }
  0x73   : > { %837 = vperm.xlu0 %2129, %v2332_v6  }
  0x74   : > { %2106 = vset.pattern.permute.xlu1 %v2204_v15 }
  0x75   : > { %829 = vperm.xlu1 %2106, %v2317_v2  }
  0x77   : > { %845 = vperm.xlu0 %2129, %v2378_v13  }
  0x79   : > { %2108 = vset.pattern.permute.xlu1 %v2200_v5 }
  0x7a   : > { %449 = vperm.xlu1 %2108, %v2349_v9  }
  0x7b   : > { %853 = vperm.xlu0 %2129, %v2359_v10  }
  0x7e   : > { %2109 = vset.pattern.permute.xlu1 %v2199_v4 }
  0x7f   : > { %601 = vperm.xlu1 %2109, %v2344_v8   ;;  %2132 = vset.pattern.permute.xlu0 %v2201_v11 }
  0x83   : > { %2110 = vset.pattern.permute.xlu1 %v2201_v11 }
  0x84   : > { %905 = vperm.xlu1 %2110, %v2322_v3   ;;  %v2543_v3 = vsub.s32 4, %v385_v47 }
  0x88   : > { %2111 = vset.pattern.permute.xlu1 %v2198_v1 }
  0x89   : > { %381 = vperm.xlu1 %2111, %v2359_v10  }
  0x8d   : > { %2112 = vset.pattern.permute.xlu1 %v2199_v4 }
  0x8e   : > { %605 = vperm.xlu1 %2112, %v2378_v13  }
  0x92   : > { %2113 = vset.pattern.permute.xlu1 %v2203_v14 }
  0x93   : > { %757 = vperm.xlu1 %2113, %v2332_v6  }
  0x97   : > { %2116 = vset.pattern.permute.xlu1 %v2197_v0 }
  0x98   : > { %529 = vperm.xlu1 %2116, %v2349_v9  }
  0x9b   : > { %v2427_v19 = vpop.permute.xlu1 %351  ;;  %v2441_v23 = vpop.permute.xlu0 %509 }
  0x9c   : > { %2117 = vset.pattern.permute.xlu1 %v2202_v12  ;;  %3079 = vst [vmem:[#allocation6_spill] sm:$0xff] %v2441_v23  ;;  %v417_v2 = vmul.f32 %v391_v58, %v2427_v19 }
  0x9d   : > { %681 = vperm.xlu1 %2117, %v2344_v8  }
  0xa0   : > { %v2431_v20 = vpop.permute.xlu1 %429  ;;  %v2448_v25 = vpop.permute.xlu0 %585 }
  0xa1   : > { %2118 = vset.pattern.permute.xlu1 %v2197_v0  ;;  %v489_v62 = vmul.f32 %v463_v54, %v2431_v20 }
  0xa2   : > { %533 = vperm.xlu1 %2118, %v2359_v10  }
  0xa4   : > { %v2455_v27 = vpop.permute.xlu0 %589 }
  0xa5   : > { %v2435_v21 = vpop.permute.xlu1 %505  ;;  %3081 = vst [vmem:[#allocation8_spill] sm:$0xff] %v2455_v27 }
  0xa6   : > { %2119 = vset.pattern.permute.xlu1 %v2202_v12 }
  0xa7   : > { %685 = vperm.xlu1 %2119, %v2378_v13  }
  0xa8   : > { %v2460_v29 = vpop.permute.xlu0 %597 }
  0xaa   : > { %v2439_v22 = vpop.permute.xlu1 %356 }
  0xab   : > { %3078 = vst [vmem:[#allocation5_spill] sm:$0xff] %v2439_v22  ;;  %2120 = vset.pattern.permute.xlu1 %v2199_v4 }
  0xac   : > { %609 = vperm.xlu1 %2120, %v2349_v9  }
  0xad   : > { %v2467_v31 = vpop.permute.xlu0 %346 }
  0xae   : > { %v416_v0 = vmul.f32 %v387_v56, %v2467_v31 }
  0xaf   : > { %v2445_v24 = vpop.permute.xlu1 %433 }
  0xb0   : > { %3080 = vst [vmem:[#allocation7_spill] sm:$0xff] %v2445_v24  ;;  %2121 = vset.pattern.permute.xlu1 %v2201_v11 }
  0xb1   : > { %913 = vperm.xlu1 %2121, %v2335_v7   ;;  %v2473_v33 = vpop.permute.xlu0 %366  ;;  %v497_v7 = vadd.f32 %v489_v62, %v417_v2 }
  0xb2   : > { %3085 = vst [vmem:[#allocation12_spill] sm:$0xff] %v2473_v33 }
  0xb4   : > { %v2451_v26 = vpop.permute.xlu1 %361 }
  0xb5   : > { %2122 = vset.pattern.permute.xlu1 %v2199_v4  ;;  %v2481_v36 = vpop.permute.xlu0 %376  ;;  %v539_v4 = vrot.slane %v336_v55, %v2525_v53 }
  0xb6   : > { %613 = vperm.xlu1 %2122, %v2359_v10   ;;  %3088 = vst [vmem:[#allocation15_spill] sm:$0xff] %v2481_v36 }
  0xb9   : > { %v2457_v28 = vpop.permute.xlu1 %437 }
  0xba   : > { %3082 = vst [vmem:[#allocation9_spill] sm:$0xff] %v2457_v28  ;;  %2123 = vset.pattern.permute.xlu1 %v2201_v11  ;;  %v2487_v38 = vpop.permute.xlu0 %425 }
  0xbb   : > { %917 = vperm.xlu1 %2123, %v2332_v6   ;;  %v488_v1 = vmul.f32 %v459_v57, %v2487_v38  ;;  %v569_v6 = vmul.f32 %v543_v61, %v2441_v23  ;;  %v2566_v61 = vsub.s32 7, %v385_v47 }
  0xbd   : > { %v577_v17 = vadd.f32 %v569_v6, %v497_v7 }
  0xbe   : > { %v2463_v30 = vpop.permute.xlu1 %513  ;;  %v2492_v40 = vpop.permute.xlu0 %453 }
  0xbf   : > { %3083 = vst [vmem:[#allocation10_spill] sm:$0xff] %v2463_v30  ;;  %2125 = vset.pattern.permute.xlu1 %v2204_v15  ;;  %3090 = vst [vmem:[#allocation17_spill] sm:$0xff] %v2492_v40 }
  0xc0   : > { %841 = vperm.xlu1 %2125, %v2344_v8  }
  0xc2   : > { %v2469_v32 = vpop.permute.xlu1 %517 }
  0xc3   : > { %3084 = vst [vmem:[#allocation11_spill] sm:$0xff] %v2469_v32  ;;  %v2499_v42 = vpop.permute.xlu0 %909 }
  0xc4   : > { %2126 = vset.pattern.permute.xlu1 %v2202_v12  ;;  %3092 = vst [vmem:[#allocation19_spill] sm:$0xff] %v2499_v42  ;;  %v2553_v12 = vsub.s32 5, %v385_v47  ;;  %v943_v47 = vrot.slane %v337_v52, %v2566_v61 }
  0xc5   : > { %693 = vperm.xlu1 %2126, %v2359_v10  }
  0xc6   : > { %v783_v44 = vrot.slane %v337_v52, %v2553_v12  ;;  %v779_v58 = vrot.slane %v336_v55, %v2553_v12 }
  0xc7   : > { %v2475_v34 = vpop.permute.xlu1 %669 }
  0xc8   : > { %3086 = vst [vmem:[#allocation13_spill] sm:$0xff] %v2475_v34  ;;  %v2505_v45 = vpop.permute.xlu0 %665 }
  0xc9   : > { %2127 = vset.pattern.permute.xlu1 %v2203_v14  ;;  %3094 = vst [vmem:[#allocation21_spill] sm:$0xff] %v2505_v45  ;;  %v568_v14 = vmul.f32 %v539_v4, %v2435_v21  ;;  %v859_v4 = vrot.slane %v336_v55, %v2558_v16 }
  0xca   : > { %769 = vperm.xlu1 %2127, %v2349_v9  }
  0xcc   : > { %v2479_v35 = vpop.permute.xlu1 %441  ;;  %v2518_v49 = vpop.permute.xlu0 %673 }
  0xcd   : > { %3087 = vst [vmem:[#allocation14_spill] sm:$0xff] %v2479_v35  ;;  %3096 = vst [vmem:[#allocation23_spill] sm:$0xff] %v2518_v49 }
  0xce   : > { %2128 = vset.pattern.permute.xlu1 %v2201_v11 }
  0xcf   : > { %921 = vperm.xlu1 %2128, %v2344_v8   ;;  %v623_v8 = vrot.slane %v337_v52, %v2538_v63 }
  0xd0   : > { %v2532_v59 = vpop.permute.xlu0 %677 }
  0xd1   : > { %v2485_v37 = vpop.permute.xlu1 %593  ;;  %v649_v18 = vmul.f32 %v623_v8, %v2455_v27 }
  0xd2   : > { %3089 = vst [vmem:[#allocation16_spill] sm:$0xff] %v2485_v37 }
  0xd3   : > { %925 = vperm.xlu1 %2128, %v2378_v13   ;;  %v703_v13 = vrot.slane %v337_v52, %v2543_v3  ;;  %v657_v6 = vadd.f32 %v649_v18, %v577_v17  ;;  %v969_v17 = vmul.f32 %v943_v47, %v2499_v42 }
  0xd5   : > { %v729_v62 = vmul.f32 %v703_v13, %v2475_v34 }
  0xd6   : > { %v2490_v39 = vpop.permute.xlu1 %371 }
  0xd7   : > { %2130 = vset.pattern.permute.xlu1 %v2204_v15  ;;  %v699_v15 = vrot.slane %v336_v55, %v2543_v3 }
  0xd8   : > { %849 = vperm.xlu1 %2130, %v2349_v9  }
  0xd9   : > { %v728_v2 = vmul.f32 %v699_v15, %v2505_v45  ;;  %v939_v15 = vrot.slane %v336_v55, %v2566_v61 }
  0xdb   : > { %v2496_v41 = vpop.permute.xlu1 %445 }
  0xdc   : > { %3091 = vst [vmem:[#allocation18_spill] sm:$0xff] %v2496_v41  ;;  %2131 = vset.pattern.permute.xlu1 %v2201_v11  ;;  %v496_v11 = vadd.f32 %v488_v1, %v416_v0  ;;  %v863_v1 = vrot.slane %v337_v52, %v2558_v16 }
  0xdd   : > { %929 = vperm.xlu1 %2131, %v2349_v9   ;;  %v2550_v9 = vpop.permute.xlu0 %689 }
  0xde   : > { %v576_v57 = vadd.f32 %v568_v14, %v496_v11  ;;  %v737_v14 = vadd.f32 %v729_v62, %v657_v6 }
  0xe0   : > { %v2502_v43 = vpop.permute.xlu1 %749 }
  0xe1   : > { %3093 = vst [vmem:[#allocation20_spill] sm:$0xff] %v2502_v43  ;;  %933 = vperm.xlu1 %2131, %v2359_v10   ;;  %v619_v10 = vrot.slane %v336_v55, %v2538_v63  ;;  %v2569_v0 = vpop.permute.xlu0 %745  ;;  %v809_v7 = vmul.f32 %v783_v44, %v2502_v43 }
  0xe3   : > { %v648_v56 = vmul.f32 %v619_v10, %v2448_v25  ;;  %v808_v10 = vmul.f32 %v779_v58, %v2569_v0  ;;  %v817_v45 = vadd.f32 %v809_v7, %v737_v14 }
  0xe5   : > { %v2507_v46 = vpop.permute.xlu1 %521  ;;  %v656_v8 = vadd.f32 %v648_v56, %v576_v57 }
  0xe6   : > { %3095 = vst [vmem:[#allocation22_spill] sm:$0xff] %v2507_v46 }
  0xe7   : > { %v736_v34 = vadd.f32 %v728_v2, %v656_v8 }
  0xe9   : > { %v816_v23 = vadd.f32 %v808_v10, %v736_v34  ;;  %v2592_v34 = vpop.permute.xlu0 %753 }
  0xea   : > { %v2520_v50 = vpop.permute.xlu1 %825  ;;  %3103 = vst [vmem:[#allocation30_spill] sm:$0xff] %v2592_v34 }
  0xeb   : > { %3097 = vst [vmem:[#allocation24_spill] sm:$0xff] %v2520_v50  ;;  %v888_v27 = vmul.f32 %v859_v4, %v2520_v50 }
  0xed   : > { %v896_v57 = vadd.f32 %v888_v27, %v816_v23  ;;  %v2598_v2 = vpop.permute.xlu0 %761  ;;  %v338_v23 = vld [vmem:[%s2514_s12 + $0x10] sm:$0xff] }
  0xee   : > { %3104 = vst [vmem:[#allocation31_spill] sm:$0xff] %v2598_v2  ;;  %v467_v4 = vrot.slane %v338_v23, %v2516_v48  ;;  %v395_v7 = vrot.slane %v338_v23, %v2522_v51  ;;  %v547_v8 = vrot.slane %v338_v23, %v2525_v53  ;;  %v627_v47 = vrot.slane %v338_v23, %v2538_v63 }
  0xef   : > { %v2534_v60 = vpop.permute.xlu1 %525 }
  0xf0   : > { %3098 = vst [vmem:[#allocation25_spill] sm:$0xff] %v2534_v60  ;;  %v490_v10 = vmul.f32 %v467_v4, %v2445_v24 }
  0xf1   : > { %v2604_v6 = vpop.permute.xlu0 %765 }
  0xf2   : > { %3106 = vst [vmem:[#allocation33_spill] sm:$0xff] %v2604_v6 }
  0xf4   : > { %v2546_v5 = vpop.permute.xlu1 %829 }
  0xf5   : > { %3099 = vst [vmem:[#allocation26_spill] sm:$0xff] %v2546_v5  ;;  %v889_v13 = vmul.f32 %v863_v1, %v2546_v5 }
  0xf7   : > { %v897_v18 = vadd.f32 %v889_v13, %v817_v45  ;;  %v418_v13 = vmul.f32 %v395_v7, %v2439_v22  ;;  %v787_v7 = vrot.slane %v338_v23, %v2553_v12 }
  0xf9   : > { %v2562_v54 = vpop.permute.xlu1 %449  ;;  %v977_v58 = vadd.f32 %v969_v17, %v897_v18  ;;  %v339_v17 = vld [vmem:[%s2514_s12 + $0x18] sm:$0xff]  ;;  %v2615_v18 = vpop.permute.xlu0 %773 }
  0xfa   : > { %v399_v4 = vrot.slane %v339_v17, %v2522_v51  ;;  %v551_v5 = vrot.slane %v339_v17, %v2525_v53  ;;  %v711_v43 = vrot.slane %v339_v17, %v2543_v3 }
  0xfd   : > { %v2628_v22 = vpop.permute.xlu0 %833 }
  0xfe   : > { %v2576_v11 = vpop.permute.xlu1 %601 }
 0x103   : > { %v2583_v44 = vpop.permute.xlu1 %905 }
 0x104   : > { %3100 = vst [vmem:[#allocation27_spill] sm:$0xff] %v2583_v44  ;;  %v968_v56 = vmul.f32 %v939_v15, %v2583_v44  ;;  %v570_v15 = vmul.f32 %v547_v8, %v2463_v30  ;;  %v571_v44 = vmul.f32 %v551_v5, %v2469_v32 }
 0x106   : > { %v976_v52 = vadd.f32 %v968_v56, %v896_v57  ;;  %v498_v56 = vadd.f32 %v490_v10, %v418_v13  ;;  %v471_v57 = vrot.slane %v339_v17, %v2516_v48  ;;  %v867_v13 = vrot.slane %v338_v23, %v2558_v16 }
 0x108   : > { %1972 = vmatprep.mubr.msk.f32.mxu0 %vm993_vm3, %v976_v52  ;;  %v2587_v62 = vpop.permute.xlu1 %381  ;;  %v707_v52 = vrot.slane %v338_v23, %v2543_v3  ;;  %v578_v24 = vadd.f32 %v570_v15, %v498_v56  ;;  %v491_v8 = vmul.f32 %v471_v57, %v2457_v28  ;;  %v810_v15 = vmul.f32 %v787_v7, %v2592_v34 }
 0x109   : > { %3101 = vst [vmem:[#allocation28_spill] sm:$0xff] %v2587_v62  ;;  %1973 = vmatmul.mubr.msk.f32.vlgmr.msra.gmra.mrb[0].mxu0 %vm993_vm3, %v977_v58  ;;  %v650_v58 = vmul.f32 %v627_v47, %v2485_v37  ;;  %v631_v47 = vrot.slane %v339_v17, %v2538_v63  ;;  %v419_v37 = vmul.f32 %v399_v4, %v2451_v26 }
 0x10a   : > { %v730_v30 = vmul.f32 %v707_v52, %v2518_v49  ;;  %v947_v52 = vrot.slane %v338_v23, %v2566_v61  ;;  %v791_v4 = vrot.slane %v339_v17, %v2553_v12  ;;  %v731_v7 = vmul.f32 %v711_v43, %v2532_v59 }
 0x10b   : > { %v658_v10 = vadd.f32 %v650_v58, %v578_v24  ;;  %v499_v57 = vadd.f32 %v491_v8, %v419_v37  ;;  %v890_v24 = vmul.f32 %v867_v13, %v2628_v22  ;;  %v651_v58 = vmul.f32 %v631_v47, %v2460_v29  ;;  %v2655_v47 = vld [vmem:[%s2514_s12 + $0x20] sm:$0xff] }
 0x10c   : > { %v871_v23 = vrot.slane %v339_v17, %v2558_v16 }
 0x10d   : > { %v2590_v55 = vpop.permute.xlu1 %605  ;;  %v738_v28 = vadd.f32 %v730_v30, %v658_v10  ;;  %v579_v49 = vadd.f32 %v571_v44, %v499_v57  ;;  %v2647_v10 = vpop.permute.xlu0 %837 }
 0x10e   : > { %3102 = vst [vmem:[#allocation29_spill] sm:$0xff] %v2590_v55  ;;  %v891_v43 = vmul.f32 %v871_v23, %v2647_v10  ;;  %v635_v23 = vrot.slane %v2655_v47, %v2538_v63 }
 0x10f   : > { %v818_v50 = vadd.f32 %v810_v15, %v738_v28  ;;  %v659_v30 = vadd.f32 %v651_v58, %v579_v49  ;;  %v403_v15 = vrot.slane %v2655_v47, %v2522_v51 }
 0x111   : > { %v898_v34 = vadd.f32 %v890_v24, %v818_v50  ;;  %v739_v28 = vadd.f32 %v731_v7, %v659_v30  ;;  %v951_v50 = vrot.slane %v339_v17, %v2566_v61  ;;  %v555_v17 = vrot.slane %v2655_v47, %v2525_v53 }
 0x112   : > { %v2594_v45 = vpop.permute.xlu1 %757  ;;  %v420_v7 = vmul.f32 %v403_v15, %v2473_v33 }
 0x113   : > { %v811_v37 = vmul.f32 %v791_v4, %v2594_v45 }
 0x115   : > { %v819_v13 = vadd.f32 %v811_v37, %v739_v28 }
 0x117   : > { %v2596_v1 = vpop.permute.xlu1 %529  ;;  %v899_v57 = vadd.f32 %v891_v43, %v819_v13  ;;  %v572_v13 = vmul.f32 %v555_v17, %v2507_v46 }
 0x11c   : > { %v2601_v27 = vpop.permute.xlu1 %681 }
 0x11d   : > { %3105 = vst [vmem:[#allocation32_spill] sm:$0xff] %v2601_v27 }
 0x121   : > { %v2610_v14 = vpop.permute.xlu1 %533 }
 0x126   : > { %v2620_v42 = vpop.permute.xlu1 %685 }
 0x127   : > { %3107 = vst [vmem:[#allocation34_spill] sm:$0xff] %v2620_v42 }
 0x12b   : > { %v2634_v56 = vpop.permute.xlu1 %609 }
 0x130   : > { %v2641_v5 = vpop.permute.xlu1 %913 }
 0x131   : > { %v970_v32 = vmul.f32 %v947_v52, %v2641_v5 }
 0x133   : > { %v978_v8 = vadd.f32 %v970_v32, %v898_v34  ;;  %v475_v32 = vrot.slane %v2655_v47, %v2516_v48  ;;  %v2664_v34 = vld [vmem:[%s2514_s12 + $0x28] sm:$0xff] }
 0x134   : > { %v479_v52 = vrot.slane %v2664_v34, %v2516_v48  ;;  %v407_v4 = vrot.slane %v2664_v34, %v2522_v51  ;;  %v559_v37 = vrot.slane %v2664_v34, %v2525_v53  ;;  %v639_v43 = vrot.slane %v2664_v34, %v2538_v63 }
 0x135   : > { %1975 = vmatprep.mubr.msk.f32.mxu0 %vm993_vm3, %v978_v8  ;;  %v2650_v44 = vpop.permute.xlu1 %613  ;;  %v492_v30 = vmul.f32 %v475_v32, %v2479_v35  ;;  %v719_v15 = vrot.slane %v2664_v34, %v2543_v3 }
 0x136   : > { %v493_v28 = vmul.f32 %v479_v52, %v2496_v41  ;;  %v795_v52 = vrot.slane %v2655_v47, %v2553_v12  ;;  %v2698_v41 = vld [vmem:[%s2514_s12 + $0x30] sm:$0xff]  ;;  %v653_v33 = vmul.f32 %v639_v43, %v2590_v55 }
 0x137   : > { %v500_v32 = vadd.f32 %v492_v30, %v420_v7  ;;  %v2705_v7 = vld [vmem:[%s2514_s12 + $0x38] sm:$0xff]  ;;  %v483_v43 = vrot.slane %v2698_v41, %v2516_v48  ;;  %s315_s12 = scalar_lea.vmem [#allocation2], %s1911_s24  ;;  %s2139_s24 = scalar_lea.vmem %s2138_s22, 256 }
 0x138   : > { %s1836_s13 = sshll.u32 %s315_s12, 4  ;;  %s2995_s13 = int_to_ptr.vmem [resolvable:$true] %s1836_s13 }
 0x139   : > { %v580_v35 = vadd.f32 %v572_v13, %v500_v32  ;;  %v812_v13 = vmul.f32 %v795_v52, %v2598_v2  ;;  %v494_v55 = vmul.f32 %v483_v43, %v2562_v54  ;;  %s2133_s21 = scalar_lea.vmem %s2995_s13, 128  ;;  %p2140_p0 = scmp.lt.s32.totalorder %s2995_s13, %s2138_s22 }
 0x13a   : > { %v2657_v49 = vpop.permute.xlu1 %917  ;;  %p2134_p11 = scmp.ne.s32.totalorder %s2995_s13, %s2133_s21  ;;  %p2141_p1 = scmp.lt.s32.totalorder %s2139_s24, %s2133_s21 }
 0x13b   : > { %3108 = vst [vmem:[#allocation35_spill] sm:$0xff] %v2657_v49  ;;  %v971_v24 = vmul.f32 %v951_v50, %v2657_v49  ;;  %v715_v50 = vrot.slane %v2655_v47, %v2543_v3 }
 0x13c   : > { %p2135_p12 = pnand %p2134_p11, %p2293_p5  ;;  %p2142_p2 = por %p2141_p1, %p2140_p0 }
 0x13d   : > { %v979_v58 = vadd.f32 %v971_v24, %v899_v57  ;;  %v421_v57 = vmul.f32 %v407_v4, %v2490_v39  ;;  %v573_v24 = vmul.f32 %v559_v37, %v2534_v60  ;;  %v732_v49 = vmul.f32 %v715_v50, %v2601_v27 }
 0x13e   : > { %v799_v4 = vrot.slane %v2664_v34, %v2553_v12  ;;  %v875_v60 = vrot.slane %v2655_v47, %v2558_v16  ;;  %p2136_p13 = pneg %p2135_p12 }
 0x13f   : > { %1976 = vmatmul.mubr.msk.f32.gmra.mrb[2].mxu0 %vm993_vm3, %v979_v58  ;;  %v2680_v8 = vpop.permute.xlu1 %841  ;;  %v652_v58 = vmul.f32 %v635_v23, %v2576_v11  ;;  %v501_v46 = vadd.f32 %v493_v28, %v421_v57  ;;  %v733_v23 = vmul.f32 %v719_v15, %v2620_v42  ;;  %v411_v28 = vrot.slane %v2698_v41, %v2522_v51  ;;  %v2726_v42 = vpop.permute.xlu0 %845 }
 0x140   : > { %3109 = vst [vmem:[#allocation36_spill] sm:$0xff] %v2680_v8  ;;  %v563_v15 = vrot.slane %v2698_v41, %v2525_v53  ;;  %p2143_p3 = pnand %p2142_p2, %p2136_p13 }
 0x141   : > { %v581_v30 = vadd.f32 %v573_v24, %v501_v46  ;;  %v660_v37 = vadd.f32 %v652_v58, %v580_v35  ;;  %v487_v35 = vrot.slane %v2705_v7, %v2516_v48  ;;  %v415_v46 = vrot.slane %v2705_v7, %v2522_v51 }
 0x142   : > { %v879_v24 = vrot.slane %v2664_v34, %v2558_v16  ;;  %v813_v58 = vmul.f32 %v799_v4, %v2604_v6  ;;  %v422_v2 = vmul.f32 %v411_v28, %v2481_v36  ;;  %v647_v4 = vrot.slane %v2705_v7, %v2538_v63 }
 0x143   : > { %v661_v50 = vadd.f32 %v653_v33, %v581_v30  ;;  %v740_v32 = vadd.f32 %v732_v49, %v660_v37  ;;  %v892_v33 = vmul.f32 %v875_v60, %v2680_v8  ;;  %v955_v49 = vrot.slane %v2655_v47, %v2566_v61 }
 0x144   : > { %v2695_v17 = vpop.permute.xlu1 %693  ;;  %v567_v30 = vrot.slane %v2705_v7, %v2525_v53  ;;  %v643_v37 = vrot.slane %v2698_v41, %v2538_v63  ;;  %v423_v60 = vmul.f32 %v415_v46, %v2587_v62  ;;  %v893_v47 = vmul.f32 %v879_v24, %v2726_v42 }
 0x145   : > { %v741_v52 = vadd.f32 %v733_v23, %v661_v50  ;;  %v820_v23 = vadd.f32 %v812_v13, %v740_v32  ;;  %v495_v50 = vmul.f32 %v487_v35, %v2492_v40  ;;  %v959_v8 = vrot.slane %v2664_v34, %v2566_v61 }
 0x146   : > { %v574_v27 = vmul.f32 %v563_v15, %v2596_v1  ;;  %v723_v13 = vrot.slane %v2698_v41, %v2543_v3  ;;  %v727_v32 = vrot.slane %v2705_v7, %v2543_v3  ;;  %v502_v35 = vadd.f32 %v494_v55, %v422_v2 }
 0x147   : > { %v821_v28 = vadd.f32 %v813_v58, %v741_v52  ;;  %v900_v36 = vadd.f32 %v892_v33, %v820_v23  ;;  %v575_v46 = vmul.f32 %v567_v30, %v2610_v14  ;;  %v654_v24 = vmul.f32 %v643_v37, %v2634_v56 }
 0x148   : > { %v503_v62 = vadd.f32 %v495_v50, %v423_v60  ;;  %v803_v34 = vrot.slane %v2698_v41, %v2553_v12  ;;  %v582_v58 = vadd.f32 %v574_v27, %v502_v35  ;;  %v655_v33 = vmul.f32 %v647_v4, %v2650_v44 }
 0x149   : > { %v2715_v57 = vpop.permute.xlu1 %769  ;;  %v901_v52 = vadd.f32 %v893_v47, %v821_v28  ;;  %v734_v55 = vmul.f32 %v723_v13, %v2550_v9  ;;  %v883_v2 = vrot.slane %v2698_v41, %v2558_v16  ;;  %v735_v37 = vmul.f32 %v727_v32, %v2695_v17 }
 0x14a   : > { %v662_v30 = vadd.f32 %v654_v24, %v582_v58  ;;  %v807_v27 = vrot.slane %v2705_v7, %v2553_v12  ;;  %v814_v4 = vmul.f32 %v803_v34, %v2715_v57  ;;  %v963_v28 = vrot.slane %v2698_v41, %v2566_v61  ;;  %v1511_v41 = vld [vmem:[%s3039_s4] sm:$0xff] }
 0x14c   : > { %v742_v47 = vadd.f32 %v734_v55, %v662_v30  ;;  %v815_v13 = vmul.f32 %v807_v27, %v2615_v18  ;;  %v1512_v55 = vld [vmem:[%s3039_s4 + $0x8] sm:$0xff] }
 0x14d   : > { %v2021_v30 = vpack.c.bf16 %v1512_v55, %v1511_v41 }
 0x14e   : > { %v2742_v6 = vpop.permute.xlu1 %921  ;;  %v822_v32 = vadd.f32 %v814_v4, %v742_v47 }
 0x14f   : > { %v972_v43 = vmul.f32 %v955_v49, %v2742_v6  ;;  %2022 = vmatprep.subr.bf16.mxu1 %v2021_v30 }
 0x150   : > { %2024 = vmatpush3.bf16.msra.mxu1 %v2021_v30 }
 0x151   : > { %v980_v40 = vadd.f32 %v972_v43, %v900_v36  ;;  %v583_v36 = vadd.f32 %v575_v46, %v503_v62  ;;  %v2776_v43 = vpop.permute.xlu0 %853  ;;  %v967_v46 = vrot.slane %v2705_v7, %v2566_v61 }
 0x152   : > { %v2756_v15 = vpop.permute.xlu1 %925 }
 0x153   : > { %v973_v49 = vmul.f32 %v959_v8, %v2756_v15  ;;  %1978 = vmatprep.mubr.msk.f32.mxu0 %vm993_vm3, %v980_v40  ;;  %v663_v50 = vadd.f32 %v655_v33, %v583_v36  ;;  %v887_v40 = vrot.slane %v2705_v7, %v2558_v16  ;;  %v1513_v7 = vld [vmem:[%s3039_s4 + $0x10] sm:$0xff] }
 0x155   : > { %v981_v23 = vadd.f32 %v973_v49, %v901_v52  ;;  %v743_v60 = vadd.f32 %v735_v37, %v663_v50  ;;  %v895_v34 = vmul.f32 %v887_v40, %v2776_v43  ;;  %v1514_v37 = vld [vmem:[%s3039_s4 + $0x18] sm:$0xff]  ;;  %v2805_v50 = vld [vmem:[%s3038_s3] ss:$0 sm:$0xff] }
 0x157   : > { %1979 = vmatmul.mubr.msk.f32.gmra.mrb[4].mxu0 %vm993_vm3, %v981_v23  ;;  %v2769_v8 = vpop.permute.xlu1 %849  ;;  %v823_v24 = vadd.f32 %v815_v13, %v743_v60  ;;  %v2025_v23 = vpack.c.bf16 %v1514_v37, %v1513_v7 }
 0x158   : > { %v894_v62 = vmul.f32 %v883_v2, %v2769_v8 }
 0x159   : > { %v903_v2 = vadd.f32 %v895_v34, %v823_v24  ;;  %2026 = vmatprep.subr.bf16.mxu1 %v2025_v23 }
 0x15a   : > { %v902_v58 = vadd.f32 %v894_v62, %v822_v32  ;;  %2028 = vmatpush3.bf16.msra.mxu1 %v2025_v23 }
 0x15c   : > { %v2779_v35 = vpop.permute.xlu1 %929 }
 0x15d   : > { %v974_v52 = vmul.f32 %v963_v28, %v2779_v35 }
 0x15f   : > { %v982_v33 = vadd.f32 %v974_v52, %v902_v58 }
 0x160   : > { %v2785_v49 = vpop.permute.xlu1 %933 }
 0x161   : > { %v975_v36 = vmul.f32 %v967_v46, %v2785_v49  ;;  %1981 = vmatprep.mubr.msk.f32.mxu0 %vm993_vm3, %v982_v33 }
 0x163   : > { %v983_v27 = vadd.f32 %v975_v36, %v903_v2 }
 0x165   : > { %1982 = vmatmul.mubr.msk.f32.gmra.mrb[6].mxu0 %vm993_vm3, %v983_v27 }
 0x1dc   : > { %v1974_v4 = vpop.f32.mrb[0].mxu0 }
 0x1dd   : > { %v1094_v40 = vadd.f32 %v1974_v4, %v2805_v50  ;;  %v1088_v60 = vpop.f32.mrb[1].mxu0 }
 0x1de   : > { %v1089_v47 = vadd.f32 %v2805_v50, %v1088_v60 }
 0x1df   : > { %v1128_v62 = vmax.f32 %v1094_v40, 0.0 }
 0x1e0   : > { %v1127_v28 = vmax.f32 %v1089_v47, 0.0  ;;  %v3111_v47 = vld [vmem:[#allocation21_spill] sm:$0xff] }
 0x1e1   : > { %v1142_v13 = vrot.slane %v1128_v62, %v2522_v51  ;;  %v1182_v34 = vrot.slane %v1128_v62, %v2516_v48  ;;  %v1230_v41 = vrot.slane %v1128_v62, %v2525_v53  ;;  %v1278_v7 = vrot.slane %v1128_v62, %v2538_v63 }
 0x1e2   : > { %v1138_v32 = vrot.slane %v1127_v28, %v2522_v51  ;;  %v1178_v46 = vrot.slane %v1127_v28, %v2516_v48  ;;  %v1226_v24 = vrot.slane %v1127_v28, %v2525_v53  ;;  %v1274_v58 = vrot.slane %v1127_v28, %v2538_v63 }
 0x1e3   : > { %v1322_v55 = vrot.slane %v1127_v28, %v2543_v3  ;;  %v1168_v30 = vmul.f32 %v1142_v13, %v2427_v19  ;;  %v1208_v37 = vmul.f32 %v1182_v34, %v2431_v20  ;;  %v1370_v27 = vrot.slane %v1127_v28, %v2553_v12 }
 0x1e4   : > { %v1167_v52 = vmul.f32 %v1138_v32, %v2467_v31  ;;  %v1207_v33 = vmul.f32 %v1178_v46, %v2487_v38  ;;  %v1255_v36 = vmul.f32 %v1226_v24, %v2435_v21  ;;  %v1303_v23 = vmul.f32 %v1274_v58, %v2448_v25  ;;  %v3110_v38 = vld [vmem:[#allocation6_spill] sm:$0xff]  ;;  %v3112_v24 = vld [vmem:[#allocation8_spill] sm:$0xff] }
 0x1e5   : > { %v1216_v4 = vadd.f32 %v1208_v37, %v1168_v30  ;;  %v1256_v40 = vmul.f32 %v1230_v41, %v3110_v38  ;;  %v1326_v60 = vrot.slane %v1128_v62, %v2543_v3  ;;  %v1351_v32 = vmul.f32 %v1322_v55, %v3111_v47  ;;  %v3116_v38 = vld [vmem:[#allocation27_spill] sm:$0xff] }
 0x1e6   : > { %v1215_v2 = vadd.f32 %v1207_v33, %v1167_v52  ;;  %v1418_v46 = vrot.slane %v1127_v28, %v2558_v16  ;;  %v1304_v19 = vmul.f32 %v1278_v7, %v3112_v24  ;;  %v1374_v20 = vrot.slane %v1128_v62, %v2553_v12  ;;  %v3113_v33 = vld [vmem:[#allocation13_spill] sm:$0xff] }
 0x1e7   : > { %v1264_v21 = vadd.f32 %v1256_v40, %v1216_v4  ;;  %v1399_v25 = vmul.f32 %v1370_v27, %v2569_v0  ;;  %v1466_v13 = vrot.slane %v1127_v28, %v2566_v61  ;;  %v1352_v41 = vmul.f32 %v1326_v60, %v3113_v33  ;;  %v3117_v27 = vld [vmem:[#allocation26_spill] sm:$0xff]  ;;  %v3118_v60 = vld [vmem:[#allocation19_spill] sm:$0xff] }
 0x1e8   : > { %v1263_v31 = vadd.f32 %v1255_v36, %v1215_v2  ;;  %v1422_v2 = vrot.slane %v1128_v62, %v2558_v16  ;;  %v3114_v36 = vld [vmem:[#allocation24_spill] sm:$0xff]  ;;  %v1470_v7 = vrot.slane %v1128_v62, %v2566_v61 }
 0x1e9   : > { %v1312_v58 = vadd.f32 %v1304_v19, %v1264_v21  ;;  %v1447_v55 = vmul.f32 %v1418_v46, %v3114_v36  ;;  %v1495_v40 = vmul.f32 %v1466_v13, %v3116_v38  ;;  %v3119_v36 = vld [vmem:[#allocation5_spill] sm:$0xff]  ;;  %v3121_v38 = vld [vmem:[#allocation10_spill] sm:$0xff] }
 0x1ea   : > { %v1311_v52 = vadd.f32 %v1303_v23, %v1263_v31  ;;  %v3115_v23 = vld [vmem:[#allocation20_spill] sm:$0xff]  ;;  %v1448_v28 = vmul.f32 %v1422_v2, %v3117_v27  ;;  %v3122_v27 = vld [vmem:[#allocation9_spill] sm:$0xff] }
 0x1eb   : > { %v1360_v37 = vadd.f32 %v1352_v41, %v1312_v58  ;;  %v1400_v31 = vmul.f32 %v1374_v20, %v3115_v23 }
 0x1ec   : > { %v1359_v34 = vadd.f32 %v1351_v32, %v1311_v52  ;;  %v1496_v52 = vmul.f32 %v1470_v7, %v3118_v60 }
 0x1ed   : > { %v1408_v0 = vadd.f32 %v1400_v31, %v1360_v37 }
 0x1ee   : > { %v1407_v30 = vadd.f32 %v1399_v25, %v1359_v34 }
 0x1ef   : > { %v1456_v32 = vadd.f32 %v1448_v28, %v1408_v0 }
 0x1f0   : > { %v1455_v4 = vadd.f32 %v1447_v55, %v1407_v30  ;;  %v3120_v30 = vld [vmem:[#allocation7_spill] sm:$0xff] }
 0x1f1   : > { %v1504_v46 = vadd.f32 %v1496_v52, %v1456_v32 }
 0x1f2   : > { %v1503_v47 = vadd.f32 %v1495_v40, %v1455_v4 }
 0x1f4   : > { %1992 = vmatprep.mubr.msk.f32.mxu1 %vm1522_vm4, %v1503_v47  ;;  %v3123_v47 = vld [vmem:[#allocation16_spill] sm:$0xff] }
 0x1f5   : > { %1993 = vmatmul.mubr.msk.f32.vlgmr.msra.gmra.mrb[0].mxu1 %vm1522_vm4, %v1504_v46 }
 0x212   : > { %v1977_v21 = vpop.f32.mrb[2].mxu0 }
 0x213   : > { %v1104_v24 = vadd.f32 %v1977_v21, %v2805_v50  ;;  %v1098_v62 = vpop.f32.mrb[3].mxu0  ;;  %v3124_v21 = vld [vmem:[#allocation11_spill] sm:$0xff] }
 0x214   : > { %v1099_v19 = vadd.f32 %v2805_v50, %v1098_v62 }
 0x215   : > { %v1130_v20 = vmax.f32 %v1104_v24, 0.0 }
 0x216   : > { %v1129_v25 = vmax.f32 %v1099_v19, 0.0  ;;  %v3125_v19 = vld [vmem:[#allocation23_spill] sm:$0xff] }
 0x217   : > { %v1150_v13 = vrot.slane %v1130_v20, %v2522_v51  ;;  %v1190_v41 = vrot.slane %v1130_v20, %v2516_v48  ;;  %v1238_v23 = vrot.slane %v1130_v20, %v2525_v53  ;;  %v1286_v7 = vrot.slane %v1130_v20, %v2538_v63 }
 0x218   : > { %v1146_v34 = vrot.slane %v1129_v25, %v2522_v51  ;;  %v1186_v58 = vrot.slane %v1129_v25, %v2516_v48  ;;  %v1234_v33 = vrot.slane %v1129_v25, %v2525_v53  ;;  %v1282_v2 = vrot.slane %v1129_v25, %v2538_v63 }
 0x219   : > { %v1330_v31 = vrot.slane %v1129_v25, %v2543_v3  ;;  %v1170_v0 = vmul.f32 %v1150_v13, %v2451_v26  ;;  %v1210_v28 = vmul.f32 %v1190_v41, %v3122_v27  ;;  %v1378_v60 = vrot.slane %v1129_v25, %v2553_v12  ;;  %v3126_v41 = vld [vmem:[#allocation30_spill] sm:$0xff] }
 0x21a   : > { %v1169_v55 = vmul.f32 %v1146_v34, %v3119_v36  ;;  %v1209_v37 = vmul.f32 %v1186_v58, %v3120_v30  ;;  %v1257_v40 = vmul.f32 %v1234_v33, %v3121_v38  ;;  %v1305_v32 = vmul.f32 %v1282_v2, %v3123_v47 }
 0x21b   : > { %v1218_v46 = vadd.f32 %v1210_v28, %v1170_v0  ;;  %v1258_v24 = vmul.f32 %v1238_v23, %v3124_v21  ;;  %v1334_v62 = vrot.slane %v1130_v20, %v2543_v3  ;;  %v1353_v34 = vmul.f32 %v1330_v31, %v3125_v19 }
 0x21c   : > { %v1217_v4 = vadd.f32 %v1209_v37, %v1169_v55  ;;  %v1426_v58 = vrot.slane %v1129_v25, %v2558_v16  ;;  %v1306_v26 = vmul.f32 %v1286_v7, %v2460_v29  ;;  %v1382_v13 = vrot.slane %v1130_v20, %v2553_v12 }
 0x21d   : > { %v1266_v33 = vadd.f32 %v1258_v24, %v1218_v46  ;;  %v1401_v2 = vmul.f32 %v1378_v60, %v3126_v41  ;;  %v1474_v55 = vrot.slane %v1129_v25, %v2566_v61  ;;  %v1354_v23 = vmul.f32 %v1334_v62, %v2532_v59  ;;  %v3127_v60 = vld [vmem:[#allocation35_spill] sm:$0xff] }
 0x21e   : > { %v1265_v52 = vadd.f32 %v1257_v40, %v1217_v4  ;;  %v1430_v4 = vrot.slane %v1130_v20, %v2558_v16  ;;  %v1449_v31 = vmul.f32 %v1426_v58, %v2628_v22  ;;  %v1402_v0 = vmul.f32 %v1382_v13, %v2594_v45 }
 0x21f   : > { %v1314_v37 = vadd.f32 %v1306_v26, %v1266_v33  ;;  %v1478_v29 = vrot.slane %v1130_v20, %v2566_v61  ;;  %v1497_v27 = vmul.f32 %v1474_v55, %v2641_v5  ;;  %v3129_v26 = vld [vmem:[#allocation14_spill] sm:$0xff] }
 0x220   : > { %v1313_v36 = vadd.f32 %v1305_v32, %v1265_v52  ;;  %v1450_v25 = vmul.f32 %v1430_v4, %v2647_v10 }
 0x221   : > { %v1362_v40 = vadd.f32 %v1354_v23, %v1314_v37  ;;  %v1498_v59 = vmul.f32 %v1478_v29, %v3127_v60  ;;  %v3130_v37 = vld [vmem:[#allocation22_spill] sm:$0xff] }
 0x222   : > { %v1361_v30 = vadd.f32 %v1353_v34, %v1313_v36  ;;  %v3128_v36 = vld [vmem:[#allocation12_spill] sm:$0xff] }
 0x223   : > { %v1410_v28 = vadd.f32 %v1402_v0, %v1362_v40 }
 0x224   : > { %v1409_v38 = vadd.f32 %v1401_v2, %v1361_v30 }
 0x225   : > { %v1458_v32 = vadd.f32 %v1450_v25, %v1410_v28 }
 0x226   : > { %v1457_v7 = vadd.f32 %v1449_v31, %v1409_v38  ;;  %v3131_v31 = vld [vmem:[#allocation18_spill] sm:$0xff] }
 0x227   : > { %v1506_v22 = vadd.f32 %v1498_v59, %v1458_v32 }
 0x228   : > { %v1505_v47 = vadd.f32 %v1497_v27, %v1457_v7  ;;  %v3132_v27 = vld [vmem:[#allocation25_spill] sm:$0xff] }
 0x22a   : > { %v1980_v52 = vpop.f32.mrb[4].mxu0  ;;  %1995 = vmatprep.mubr.msk.f32.mxu1 %vm1522_vm4, %v1505_v47  ;;  %v3133_v47 = vld [vmem:[#allocation32_spill] sm:$0xff] }
 0x22b   : > { %v1114_v46 = vadd.f32 %v1980_v52, %v2805_v50  ;;  %v1108_v21 = vpop.f32.mrb[5].mxu0  ;;  %1996 = vmatmul.mubr.msk.f32.gmra.mrb[2].mxu1 %vm1522_vm4, %v1506_v22 }
 0x22c   : > { %v1109_v45 = vadd.f32 %v2805_v50, %v1108_v21 }
 0x22d   : > { %v1132_v20 = vmax.f32 %v1114_v46, 0.0  ;;  %v3134_v46 = vld [vmem:[#allocation29_spill] sm:$0xff] }
 0x22e   : > { %v1131_v5 = vmax.f32 %v1109_v45, 0.0 }
 0x22f   : > { %v1158_v24 = vrot.slane %v1132_v20, %v2522_v51  ;;  %v1198_v34 = vrot.slane %v1132_v20, %v2516_v48  ;;  %v1246_v41 = vrot.slane %v1132_v20, %v2525_v53  ;;  %v1294_v55 = vrot.slane %v1132_v20, %v2538_v63 }
 0x230   : > { %v1154_v10 = vrot.slane %v1131_v5, %v2522_v51  ;;  %v1194_v62 = vrot.slane %v1131_v5, %v2516_v48  ;;  %v1242_v19 = vrot.slane %v1131_v5, %v2525_v53  ;;  %v1290_v58 = vrot.slane %v1131_v5, %v2538_v63 }
 0x231   : > { %v1338_v2 = vrot.slane %v1131_v5, %v2543_v3  ;;  %v1172_v4 = vmul.f32 %v1158_v24, %v2490_v39  ;;  %v1212_v38 = vmul.f32 %v1198_v34, %v3131_v31  ;;  %v1386_v0 = vrot.slane %v1131_v5, %v2553_v12 }
 0x232   : > { %v1171_v33 = vmul.f32 %v1154_v10, %v3128_v36  ;;  %v1211_v13 = vmul.f32 %v1194_v62, %v3129_v26  ;;  %v1259_v23 = vmul.f32 %v1242_v19, %v3130_v37  ;;  %v1307_v40 = vmul.f32 %v1290_v58, %v2576_v11  ;;  %v3135_v10 = vld [vmem:[#allocation31_spill] sm:$0xff] }
 0x233   : > { %v1220_v7 = vadd.f32 %v1212_v38, %v1172_v4  ;;  %v1260_v28 = vmul.f32 %v1246_v41, %v3132_v27  ;;  %v1342_v25 = vrot.slane %v1132_v20, %v2543_v3  ;;  %v1355_v32 = vmul.f32 %v1338_v2, %v3133_v47  ;;  %v3137_v41 = vld [vmem:[#allocation36_spill] sm:$0xff] }
 0x234   : > { %v1219_v30 = vadd.f32 %v1211_v13, %v1171_v33  ;;  %v1434_v60 = vrot.slane %v1131_v5, %v2558_v16  ;;  %v1482_v59 = vrot.slane %v1131_v5, %v2566_v61  ;;  %v1308_v21 = vmul.f32 %v1294_v55, %v3134_v46  ;;  %v3136_v33 = vld [vmem:[#allocation34_spill] sm:$0xff]  ;;  %v3140_v46 = vld [vmem:[#allocation28_spill] sm:$0xff] }
 0x235   : > { %v1268_v22 = vadd.f32 %v1260_v28, %v1220_v7  ;;  %v1390_v11 = vrot.slane %v1132_v20, %v2553_v12  ;;  %v1403_v62 = vmul.f32 %v1386_v0, %v3135_v10  ;;  %v1438_v19 = vrot.slane %v1132_v20, %v2558_v16 }
 0x236   : > { %v1267_v29 = vadd.f32 %v1259_v23, %v1219_v30  ;;  %v1486_v34 = vrot.slane %v1132_v20, %v2566_v61  ;;  %v1356_v26 = vmul.f32 %v1342_v25, %v3136_v33  ;;  %v1451_v2 = vmul.f32 %v1434_v60, %v3137_v41  ;;  %v3138_v23 = vld [vmem:[#allocation33_spill] sm:$0xff] }
 0x237   : > { %v1316_v5 = vadd.f32 %v1308_v21, %v1268_v22  ;;  %v1404_v4 = vmul.f32 %v1390_v11, %v3138_v23  ;;  %v1499_v31 = vmul.f32 %v1482_v59, %v2742_v6  ;;  %v1452_v38 = vmul.f32 %v1438_v19, %v2726_v42  ;;  %v3141_v21 = vld [vmem:[#allocation17_spill] sm:$0xff] }
 0x238   : > { %v1983_v52 = vpop.f32.mrb[6].mxu0  ;;  %v1315_v39 = vadd.f32 %v1307_v40, %v1267_v29  ;;  %v1500_v20 = vmul.f32 %v1486_v34, %v2756_v15 }
 0x239   : > { %v1124_v45 = vadd.f32 %v1983_v52, %v2805_v50  ;;  %v1118_v24 = vpop.f32.mrb[7].mxu0  ;;  %v1364_v37 = vadd.f32 %v1356_v26, %v1316_v5 }
 0x23a   : > { %v1119_v58 = vadd.f32 %v2805_v50, %v1118_v24  ;;  %v1363_v36 = vadd.f32 %v1355_v32, %v1315_v39  ;;  %v3139_v32 = vld [vmem:[#allocation15_spill] sm:$0xff] }
 0x23b   : > { %v1134_v13 = vmax.f32 %v1124_v45, 0.0  ;;  %v1412_v50 = vadd.f32 %v1404_v4, %v1364_v37 }
 0x23c   : > { %v1133_v55 = vmax.f32 %v1119_v58, 0.0  ;;  %v1411_v30 = vadd.f32 %v1403_v62, %v1363_v36 }
 0x23d   : > { %v1166_v28 = vrot.slane %v1134_v13, %v2522_v51  ;;  %v1206_v25 = vrot.slane %v1134_v13, %v2516_v48  ;;  %v1460_v6 = vadd.f32 %v1452_v38, %v1412_v50  ;;  %v1254_v60 = vrot.slane %v1134_v13, %v2525_v53  ;;  %v2966_v38 = vld [vmem:[%s3040_s5] ss:$0 sm:$0xff] }
 0x23e   : > { %v1459_v40 = vadd.f32 %v1451_v2, %v1411_v30  ;;  %v1162_v0 = vrot.slane %v1133_v55, %v2522_v51  ;;  %v1202_v29 = vrot.slane %v1133_v55, %v2516_v48  ;;  %v1250_v7 = vrot.slane %v1133_v55, %v2525_v53 }
 0x23f   : > { %v1298_v27 = vrot.slane %v1133_v55, %v2538_v63  ;;  %v1508_v59 = vadd.f32 %v1500_v20, %v1460_v6  ;;  %v1346_v22 = vrot.slane %v1133_v55, %v2543_v3  ;;  %v1174_v51 = vmul.f32 %v1166_v28, %v3140_v46 }
 0x240   : > { %v1507_v47 = vadd.f32 %v1499_v31, %v1459_v40  ;;  %v1173_v42 = vmul.f32 %v1162_v0, %v3139_v32  ;;  %v1213_v15 = vmul.f32 %v1202_v29, %v2562_v54  ;;  %v1261_v39 = vmul.f32 %v1250_v7, %v2596_v1 }
 0x241   : > { %v1214_v48 = vmul.f32 %v1206_v25, %v3141_v21  ;;  %v1302_v11 = vrot.slane %v1134_v13, %v2538_v63  ;;  %v1309_v54 = vmul.f32 %v1298_v27, %v2634_v56  ;;  %v1394_v53 = vrot.slane %v1133_v55, %v2553_v12 }
 0x242   : > { %1998 = vmatprep.mubr.msk.f32.mxu1 %vm1522_vm4, %v1507_v47  ;;  %v1221_v52 = vadd.f32 %v1213_v15, %v1173_v42  ;;  %v1262_v10 = vmul.f32 %v1254_v60, %v2610_v14  ;;  %v1350_v1 = vrot.slane %v1134_v13, %v2543_v3  ;;  %v1357_v19 = vmul.f32 %v1346_v22, %v2550_v9 }
 0x243   : > { %1999 = vmatmul.mubr.msk.f32.gmra.mrb[4].mxu1 %vm1522_vm4, %v1508_v59  ;;  %v1222_v24 = vadd.f32 %v1214_v48, %v1174_v51  ;;  %v1442_v34 = vrot.slane %v1133_v55, %v2558_v16  ;;  %v1310_v63 = vmul.f32 %v1302_v11, %v2650_v44  ;;  %v1398_v36 = vrot.slane %v1134_v13, %v2553_v12 }
 0x244   : > { %v1269_v45 = vadd.f32 %v1261_v39, %v1221_v52  ;;  %v1405_v56 = vmul.f32 %v1394_v53, %v2715_v57  ;;  %v1490_v33 = vrot.slane %v1133_v55, %v2566_v61  ;;  %v1358_v14 = vmul.f32 %v1350_v1, %v2695_v17 }
 0x245   : > { %v1270_v58 = vadd.f32 %v1262_v10, %v1222_v24  ;;  %v1446_v3 = vrot.slane %v1134_v13, %v2558_v16  ;;  %v1453_v9 = vmul.f32 %v1442_v34, %v2769_v8  ;;  %v1406_v30 = vmul.f32 %v1398_v36, %v2615_v18  ;;  %v1716_v18 = vld [vmem:[%s3041_s6] sm:$0xff]  ;;  %v1718_v8 = vld [vmem:[%s3041_s6 + $0x10] sm:$0xff] }
 0x246   : > { %v1317_v62 = vadd.f32 %v1309_v54, %v1269_v45  ;;  %v1494_v44 = vrot.slane %v1134_v13, %v2566_v61  ;;  %v1501_v12 = vmul.f32 %v1490_v33, %v2779_v35  ;;  %v1717_v61 = vld [vmem:[%s3041_s6 + $0x8] sm:$0xff]  ;;  %v2208_v13 = vmov 0.0  }
 0x247   : > { %v1318_v26 = vadd.f32 %v1310_v63, %v1270_v58  ;;  %v1454_v57 = vmul.f32 %v1446_v3, %v2776_v43  ;;  %v2206_v43 = vmov 0.0|0.0   ;;  %v2030_v35 = vpack.c.bf16 %v1717_v61, %v1716_v18  ;;  %2012 = vmatprep.mubr.msk.f32.mxu0 %vm2207_vm5, %v2208_v13 }
 0x248   : > { %v1365_v5 = vadd.f32 %v1357_v19, %v1317_v62  ;;  %v1502_v17 = vmul.f32 %v1494_v44, %v2785_v49  ;;  %2029 = vmatprep.subr.bf16.mxu0 %v2206_v43  ;;  %v1719_v49 = vld [vmem:[%s3041_s6 + $0x18] sm:$0xff] }
 0x249   : > { %v1366_v2 = vadd.f32 %v1358_v14, %v1318_v26  ;;  %2031 = vmatpush3.bf16.msra.mxu0 %v2030_v35  ;;  %v2033_v31 = vpack.c.bf16 %v1719_v49, %v1718_v8 }
 0x24a   : > { %v1413_v41 = vadd.f32 %v1405_v56, %v1365_v5  ;;  %2032 = vmatprep.subr.bf16.mxu0 %v2206_v43 }
 0x24b   : > { %v1414_v23 = vadd.f32 %v1406_v30, %v1366_v2 }
 0x24c   : > { %v1461_v37 = vadd.f32 %v1453_v9, %v1413_v41 }
 0x24d   : > { %v1462_v4 = vadd.f32 %v1454_v57, %v1414_v23  ;;  %2034 = vmatpush3.bf16.msra.mxu0 %v2033_v31 }
 0x24e   : > { %v1509_v55 = vadd.f32 %v1501_v12, %v1461_v37 }
 0x24f   : > { %v1510_v16 = vadd.f32 %v1502_v17, %v1462_v4 }
 0x250   : > { %2001 = vmatprep.mubr.msk.f32.mxu1 %vm1522_vm4, %v1509_v55 }
 0x251   : > { %2002 = vmatmul.mubr.msk.f32.gmra.mrb[6].mxu1 %vm1522_vm4, %v1510_v16 }
 0x2c8   : > { %v1994_v20 = vpop.f32.mrb[0].mxu1 }
 0x2c9   : > { %v1619_v40 = vadd.f32 %v1994_v20, %v2966_v38  ;;  %v1613_v50 = vpop.f32.mrb[1].mxu1 }
 0x2ca   : > { %v1614_v0 = vadd.f32 %v2966_v38, %v1613_v50 }
 0x2cb   : > { %v1653_v29 = vmax.f32 %v1619_v40, 0.0 }
 0x2cc   : > { %v1652_v7 = vmax.f32 %v1614_v0, 0.0 }
 0x2cd   : > { %v1667_v27 = vsel %vm1522_vm4, %v1653_v29, 0.0 }
 0x2ce   : > { %v1668_v28 = vrot.slane %v1667_v27, 4  ;;  %v1660_v25 = vsel %vm1522_vm4, %v1652_v7, 0.0 }
 0x2cf   : > { %v1661_v47 = vrot.slane %v1660_v25, 4 }
 0x2d0   : > { %v1669_v6 = vadd.f32 %v1668_v28, %v1667_v27 }
 0x2d1   : > { %v1662_v32 = vadd.f32 %v1661_v47, %v1660_v25 }
 0x2d2   : > { %v1670_v42 = vrot.slane %v1669_v6, 2 }
 0x2d3   : > { %v1663_v15 = vrot.slane %v1662_v32, 2 }
 0x2d4   : > { %v1671_v60 = vadd.f32 %v1670_v42, %v1669_v6 }
 0x2d5   : > { %v1664_v59 = vadd.f32 %v1663_v15, %v1662_v32 }
 0x2d6   : > { %v1672_v52 = vrot.slane %v1671_v60, 1 }
 0x2d7   : > { %v1665_v39 = vrot.slane %v1664_v59, 1 }
 0x2d8   : > { %v1673_v22 = vadd.f32 %v1672_v52, %v1671_v60 }
 0x2d9   : > { %v1666_v46 = vadd.f32 %v1665_v39, %v1664_v59 }
 0x2db   : > { %v1736_v51 = vsel %vm1735_vm6, %v1673_v22, %v1666_v46 }
 0x2fe   : > { %v1997_v21 = vpop.f32.mrb[2].mxu1 }
 0x2ff   : > { %v1629_v48 = vadd.f32 %v1997_v21, %v2966_v38  ;;  %v1623_v11 = vpop.f32.mrb[3].mxu1 }
 0x300   : > { %v1624_v45 = vadd.f32 %v2966_v38, %v1623_v11  ;;  %v1935_v11 = vld [vmem:[%s3042_s7] ss:$0 sm:$0xff] }
 0x301   : > { %v1655_v54 = vmax.f32 %v1629_v48, 0.0 }
 0x302   : > { %v1654_v53 = vmax.f32 %v1624_v45, 0.0 }
 0x303   : > { %v1681_v24 = vsel %vm1522_vm4, %v1655_v54, 0.0 }
 0x304   : > { %v1682_v10 = vrot.slane %v1681_v24, 4  ;;  %v1674_v1 = vsel %vm1522_vm4, %v1654_v53, 0.0 }
 0x305   : > { %v1675_v62 = vrot.slane %v1674_v1, 4 }
 0x306   : > { %v1683_v19 = vadd.f32 %v1682_v10, %v1681_v24 }
 0x307   : > { %v1676_v34 = vadd.f32 %v1675_v62, %v1674_v1 }
 0x308   : > { %v1684_v58 = vrot.slane %v1683_v19, 2 }
 0x309   : > { %v1677_v63 = vrot.slane %v1676_v34, 2 }
 0x30a   : > { %v1685_v36 = vadd.f32 %v1684_v58, %v1683_v19 }
 0x30b   : > { %v1678_v5 = vadd.f32 %v1677_v63, %v1676_v34 }
 0x30c   : > { %v1686_v56 = vrot.slane %v1685_v36, 1 }
 0x30d   : > { %v1679_v33 = vrot.slane %v1678_v5, 1 }
 0x30e   : > { %v1687_v14 = vadd.f32 %v1686_v56, %v1685_v36 }
 0x30f   : > { %v1680_v26 = vadd.f32 %v1679_v33, %v1678_v5 }
 0x311   : > { %v1738_v3 = vsel %vm1737_vm7, %v1680_v26, %v1736_v51 }
 0x312   : > { %v1740_v41 = vsel %vm1739_vm8, %v1687_v14, %v1738_v3 }
 0x316   : > { %v2000_v9 = vpop.f32.mrb[4].mxu1 }
 0x317   : > { %v1639_v2 = vadd.f32 %v2000_v9, %v2966_v38  ;;  %v1633_v30 = vpop.f32.mrb[5].mxu1 }
 0x318   : > { %v1634_v44 = vadd.f32 %v2966_v38, %v1633_v30 }
 0x319   : > { %v1657_v37 = vmax.f32 %v1639_v2, 0.0 }
 0x31a   : > { %v1656_v12 = vmax.f32 %v1634_v44, 0.0 }
 0x31b   : > { %v1695_v23 = vsel %vm1522_vm4, %v1657_v37, 0.0 }
 0x31c   : > { %v1696_v57 = vrot.slane %v1695_v23, 4  ;;  %v1688_v55 = vsel %vm1522_vm4, %v1656_v12, 0.0 }
 0x31d   : > { %v1689_v4 = vrot.slane %v1688_v55, 4 }
 0x31e   : > { %v1697_v17 = vadd.f32 %v1696_v57, %v1695_v23 }
 0x31f   : > { %v1690_v16 = vadd.f32 %v1689_v4, %v1688_v55 }
 0x320   : > { %v1698_v18 = vrot.slane %v1697_v17, 2 }
 0x321   : > { %v1691_v61 = vrot.slane %v1690_v16, 2 }
 0x322   : > { %v1699_v8 = vadd.f32 %v1698_v18, %v1697_v17 }
 0x323   : > { %v1692_v43 = vadd.f32 %v1691_v61, %v1690_v16 }
 0x324   : > { %v1700_v35 = vrot.slane %v1699_v8, 1  ;;  %v2003_v13 = vpop.f32.mrb[6].mxu1 }
 0x325   : > { %v1693_v49 = vrot.slane %v1692_v43, 1  ;;  %v1649_v31 = vadd.f32 %v2003_v13, %v2966_v38  ;;  %v1643_v20 = vpop.f32.mrb[7].mxu1 }
 0x326   : > { %v1644_v50 = vadd.f32 %v2966_v38, %v1643_v20  ;;  %v1701_v0 = vadd.f32 %v1700_v35, %v1699_v8 }
 0x327   : > { %v1694_v40 = vadd.f32 %v1693_v49, %v1692_v43  ;;  %v1659_v29 = vmax.f32 %v1649_v31, 0.0 }
 0x328   : > { %v1658_v27 = vmax.f32 %v1644_v50, 0.0 }
 0x329   : > { %v1742_v7 = vsel %vm1741_vm9, %v1694_v40, %v1740_v41  ;;  %v1709_v28 = vsel %vm1522_vm4, %v1659_v29, 0.0 }
 0x32a   : > { %v1744_v25 = vsel %vm1743_vm10, %v1701_v0, %v1742_v7  ;;  %v1710_v47 = vrot.slane %v1709_v28, 4  ;;  %v1702_v6 = vsel %vm1522_vm4, %v1658_v27, 0.0 }
 0x32b   : > { %v1703_v32 = vrot.slane %v1702_v6, 4 }
 0x32c   : > { %v1711_v42 = vadd.f32 %v1710_v47, %v1709_v28 }
 0x32d   : > { %v1704_v15 = vadd.f32 %v1703_v32, %v1702_v6 }
 0x32e   : > { %v1712_v60 = vrot.slane %v1711_v42, 2 }
 0x32f   : > { %v1705_v59 = vrot.slane %v1704_v15, 2 }
 0x330   : > { %v1713_v52 = vadd.f32 %v1712_v60, %v1711_v42 }
 0x331   : > { %v1706_v38 = vadd.f32 %v1705_v59, %v1704_v15 }
 0x332   : > { %v1714_v39 = vrot.slane %v1713_v52, 1 }
 0x333   : > { %v1707_v22 = vrot.slane %v1706_v38, 1 }
 0x334   : > { %v1715_v51 = vadd.f32 %v1714_v39, %v1713_v52 }
 0x335   : > { %v1708_v46 = vadd.f32 %v1707_v22, %v1706_v38 }
 0x337   : > { %v1746_v21 = vsel %vm1745_vm11, %v1708_v46, %v1744_v25 }
 0x338   : > { %v1748_v48 = vsel %vm1747_vm12, %v1715_v51, %v1746_v21 }
 0x339   : > { %2013 = vmatmul.mubr.msk.f32.vlgmr.msra.gmra.mrb[8].mxu0 %vm1522_vm4, %v1748_v48 }
 0x40c   : > { %v1817_v45 = vpop.f32.mrb[8].mxu0 }
 0x40d   : > { %v1818_v54 = vadd.f32 %v1935_v11, %v1817_v45  ;;  %v2014_v53 = vpop.f32.mrb[9].mxu0 }
 0x40f   : > { %1821 = vst [vmem:[%s315_s12] sm:$0xff] %v1818_v54 }
 0x410   : > { %2146 = shalt.err (!%p2143_p3)
}
 0x411   : > { %s2147_s23 = scalar_lea.hbm %s2993_s19, 128  ;;  %s2151_s10 = scalar_lea.hbm %s3043_s8, 256 }
 0x412   : > { %p2148_p4 = scmp.ne.s32.totalorder %s2993_s19, %s2147_s23  ;;  %p2152_p9 = scmp.lt.u32.totalorder %s2993_s19, %s3043_s8 }
 0x413   : > { %p2153_p10 = scmp.lt.u32.totalorder %s2151_s10, %s2147_s23  ;;  %p2155_p12 = scmp.lt.u32.totalorder %s2147_s23, %s2993_s19 }
 0x414   : > { %p2149_p7 = pnand %p2148_p4, %p2293_p5 }
 0x415   : > { %p2154_p11 = por %p2153_p10, %p2152_p9 }
 0x416   : > { %p2150_p8 = pneg %p2149_p7 }
 0x417   : > { %p2156_p13 = por %p2155_p12, %p2154_p11 }
 0x419   : > { %p2157_p0 = pnand %p2156_p13, %p2150_p8 }
 0x41b   : > { %2160 = shalt.err (!%p2157_p0)
}
 0x41c   : > { %2035 = dma.vmem_to_hbm [thread:$0]  (%p2293_p5), %s2995_s13, 128, %s2993_s19, %s1823_s20  }
 0x41d PF: > { %p2041_p1 = scmp.ge.s32.totalorder %s2195_s30, 2  ;;  %s1848_s18 = sand.u32 1, %s2183_s27  }
 0x41e   : > { %s1849_s21 = scalar_lea.sflag [#allocation3], %s1848_s18 }
 0x41f   : > { %p2038_p2 = pnand %p2041_p1, %p2297_p6 }
 0x421   : > { %2178 = dma.done.wait (!%p2038_p2), %s1849_s21, 128  }
 0x422   : > { %2180 = vsyncadd (!%p2038_p2), %s1849_s21, 4294967168  ;;  %p18_p3 = scmp.ge.s32.totalorder %s2280_s11, 4   ;;  %s3142_s27 = smov %s2187_s28 }
 0x423   : > { %s3143_s28 = smov %s2191_s29  ;;  %s3144_s29 = smov %s2291_s14 }
 0x424   : > { %s3145_s30 = smov %s2280_s11  ;;  %20 = sbr.rel (!%p18_p3) target bundleno = 3 (0x3), region = 90 }
 0x42b   :  { %1854 = vsyncpa [#allocation3], 1 }
 0x42c   :  { %1856 = vsyncpa [#allocation3 + $0x1], 1 }

</bundles_post_ra>
